<compile_context>
chip_gen: v6e
topology: v6e:2x2x1
jax: 0.10.0
libtpu: 0.0.40
codegen_flags: <defaults>
</compile_context>

<pallas_src>
import functools

import jax
import jax.numpy as jnp
import numpy as np
from jax import lax
from jax.experimental import pallas as pl
from jax.experimental.pallas import tpu as pltpu


# ----------------------------------------------------------------------------
# Pallas kernel: one bidirectional LSTM layer, both directions fused.
# Grid = (num_time_chunks,), sequential ("arbitrary"); h/c carried across
# chunks inside the hn/cn output refs (VMEM-resident accumulators).
# ----------------------------------------------------------------------------
def _bidir_lstm_kernel(gates_f_ref, gates_b_ref, whh_f_ref, whh_b_ref,
                       lens_ref, out_f_ref, out_b_ref, hn_ref, cn_ref,
                       *, Tc, H, NC):
    """
    gates_f_ref: (Tc, B, 4H)  fwd  x @ W_ih^T + b, chunk i      (time-increasing)
    gates_b_ref: (Tc, B, 4H)  bwd  x @ W_ih^T + b, chunk NC-1-i (time-increasing)
    whh_*_ref  : (H, 4H)      recurrent weights (transposed), per direction
    lens_ref   : (B, 1)       int32 sequence lengths
    out_f_ref  : (Tc, B, H)   fwd hidden states for chunk i
    out_b_ref  : (Tc, B, H)   bwd hidden states for chunk NC-1-i
    hn_ref     : (2, B, H)    running / final hidden state [fwd, bwd]
    cn_ref     : (2, B, H)    running / final cell state   [fwd, bwd]
    """
    i = pl.program_id(0)

    @pl.when(i == 0)
    def _():
        hn_ref[...] = jnp.zeros_like(hn_ref)
        cn_ref[...] = jnp.zeros_like(cn_ref)

    whh_f = whh_f_ref[...]                 # hoisted out of the recurrence
    whh_b = whh_b_ref[...]
    lens = lens_ref[...]                   # (B, 1) int32

    t0_f = i * Tc                          # global start time of fwd chunk
    t0_b = (NC - 1 - i) * Tc               # global start time of bwd chunk

    # Chunk-boundary carry: load h/c once per chunk (not per timestep).
    hf0 = hn_ref[0]
    cf0 = cn_ref[0]
    hb0 = hn_ref[1]
    cb0 = cn_ref[1]

    def cell(gates, c):
        # PyTorch gate order: i, f, g, o
        i_g = jax.nn.sigmoid(gates[:, 0 * H:1 * H])
        f_g = jax.nn.sigmoid(gates[:, 1 * H:2 * H])
        g_g = jnp.tanh(gates[:, 2 * H:3 * H])
        o_g = jax.nn.sigmoid(gates[:, 3 * H:4 * H])
        c_new = f_g * c + i_g * g_g
        h_new = o_g * jnp.tanh(c_new)
        return h_new, c_new

    def step(k, carry):
        hf, cf, hb, cb = carry
        kb = Tc - 1 - k                    # bwd walks its chunk in reverse

        # Two independent chains -> scheduler interleaves MXU/EUP latency.
        gf = gates_f_ref[k] + jnp.dot(hf, whh_f,
                                      preferred_element_type=jnp.float32)
        gb = gates_b_ref[kb] + jnp.dot(hb, whh_b,
                                       preferred_element_type=jnp.float32)

        hf_new, cf_new = cell(gf, cf)
        hb_new, cb_new = cell(gb, cb)

        mf = (t0_f + k) < lens             # (B,1) -> broadcasts over H
        mb = (t0_b + kb) < lens

        out_f_ref[k] = jnp.where(mf, hf_new, 0.0)   # zeros on padding
        out_b_ref[kb] = jnp.where(mb, hb_new, 0.0)

        return (jnp.where(mf, hf_new, hf), jnp.where(mf, cf_new, cf),
                jnp.where(mb, hb_new, hb), jnp.where(mb, cb_new, cb))

    unroll = True if Tc <= 32 else 4       # modest unroll for long chunks
    hf, cf, hb, cb = lax.fori_loop(0, Tc, step, (hf0, cf0, hb0, cb0),
                                   unroll=unroll)

    hn_ref[0] = hf
    cn_ref[0] = cf
    hn_ref[1] = hb
    cn_ref[1] = cb


def bidir_lstm_layer(x, wihT_st, whhT_st, b_st, lens2d, *, time_chunk=128):
    """One bidirectional LSTM layer.

    x       : (T, B, D) f32
    wihT_st : (2, D, 4H)   stacked per-direction W_ih^T
    whhT_st : (2, H, 4H)   stacked per-direction W_hh^T
    b_st    : (2, 4H)      stacked per-direction (b_ih + b_hh)
    lens2d  : (B, 1) int32
    returns layer_out (T, B, 2H), hn (2, B, H), cn (2, B, H)
    """
    T, B, _ = x.shape
    H = whhT_st.shape[1]

    # Input projection hoisted out of the recurrence: one MXU-friendly matmul
    # over all T*B rows per direction instead of T tiny per-step matmuls.
    gates = (jnp.einsum('tbd,zdg->ztbg', x, wihT_st,
                        preferred_element_type=jnp.float32)
             + b_st[:, None, None, :])                 # (2, T, B, 4H)
    gates_f, gates_b = gates[0], gates[1]

    # Time chunking: bounds VMEM to O(Tc*B*5H) regardless of T.
    Tc = min(time_chunk, T)
    NC = pl.cdiv(T, Tc)
    Tp = NC * Tc
    if Tp != T:
        pad = jnp.zeros((Tp - T, B, 4 * H), jnp.float32)
        gates_f = jnp.concatenate([gates_f, pad], axis=0)
        gates_b = jnp.concatenate([gates_b, pad], axis=0)

    kernel = functools.partial(_bidir_lstm_kernel, Tc=Tc, H=H, NC=NC)
    out_f, out_b, hn, cn = pl.pallas_call(
        kernel,
        out_shape=(jax.ShapeDtypeStruct((Tp, B, H), jnp.float32),
                   jax.ShapeDtypeStruct((Tp, B, H), jnp.float32),
                   jax.ShapeDtypeStruct((2, B, H), jnp.float32),
                   jax.ShapeDtypeStruct((2, B, H), jnp.float32)),
        grid_spec=pltpu.PrefetchScalarGridSpec(
            num_scalar_prefetch=0,
            grid=(NC,),                                 # chunks are sequential
            in_specs=[
                pl.BlockSpec((Tc, B, 4 * H), lambda i: (i, 0, 0)),
                pl.BlockSpec((Tc, B, 4 * H), lambda i: (NC - 1 - i, 0, 0)),
                pl.BlockSpec((H, 4 * H), lambda i: (0, 0)),
                pl.BlockSpec((H, 4 * H), lambda i: (0, 0)),
                pl.BlockSpec((B, 1), lambda i: (0, 0)),
            ],
            out_specs=[
                pl.BlockSpec((Tc, B, H), lambda i: (i, 0, 0)),
                pl.BlockSpec((Tc, B, H), lambda i: (NC - 1 - i, 0, 0)),
                pl.BlockSpec((2, B, H), lambda i: (0, 0, 0)),   # accumulator
                pl.BlockSpec((2, B, H), lambda i: (0, 0, 0)),   # accumulator
            ],
        ),
        compiler_params=pltpu.CompilerParams(
            dimension_semantics=("arbitrary",),         # recurrence over chunks
            vmem_limit_bytes=32 * 1024 * 1024),
    )(gates_f, gates_b, whhT_st[0], whhT_st[1], lens2d)

    # TODO(synk): H < 128 lanes -> writeback uses masked stores; padding H to
    # 128 (and slicing here) would make the output lane-dense at scale.
    layer_out = jnp.concatenate([out_f[:T], out_b[:T]], axis=-1)   # (T, B, 2H)
    return layer_out, hn, cn


# ----------------------------------------------------------------------------
# Full CustomLSTM.forward equivalent (multi-layer, bidirectional)
# ----------------------------------------------------------------------------
@jax.jit
def custom_lstm_forward(embedded, seq_lens, params):
    """embedded: (T, B, D_in).  Returns (output (B, T, 2H), (h_n, c_n))."""
    T, B, _ = embedded.shape
    lens2d = jnp.asarray(seq_lens, jnp.int32).reshape(B, 1)

    x = embedded.astype(jnp.float32)
    h_states, c_states = [], []
    for (wihT_st, whhT_st, b_st) in params:
        x, hn, cn = bidir_lstm_layer(x, wihT_st, whhT_st, b_st, lens2d)
        h_states.append(hn)     # (2, B, H): [fwd, bwd] = PyTorch ordering
        c_states.append(cn)
        # nn.LSTM internal dropout applies only in training mode -> omitted.

    output = jnp.transpose(x, (1, 0, 2))              # output.transpose(0, 1)
    h_n = jnp.concatenate(h_states, axis=0)           # (num_layers*2, B, H)
    c_n = jnp.concatenate(c_states, axis=0)
    return output, (h_n, c_n)


# ----------------------------------------------------------------------------
# Deterministic parameter init (mirrors nn.LSTM default U(-1/sqrt(H), 1/sqrt(H)))
# Per layer: stacked-per-direction (W_ih^T (2,D,4H), W_hh^T (2,H,4H), b (2,4H)).
# ----------------------------------------------------------------------------
def init_params(key, input_dim, hidden_dim, num_layers):
    params = []
    bound = 1.0 / np.sqrt(hidden_dim)
    for layer in range(num_layers):
        d_in = input_dim if layer == 0 else 2 * hidden_dim
        wihT, whhT, b = [], [], []
        for _direction in range(2):
            key, k1, k2, k3, k4 = jax.random.split(key, 5)
            w_ih = jax.random.uniform(k1, (4 * hidden_dim, d_in),
                                      jnp.float32, -bound, bound)
            w_hh = jax.random.uniform(k2, (4 * hidden_dim, hidden_dim),
                                      jnp.float32, -bound, bound)
            b_ih = jax.random.uniform(k3, (4 * hidden_dim,),
                                      jnp.float32, -bound, bound)
            b_hh = jax.random.uniform(k4, (4 * hidden_dim,),
                                      jnp.float32, -bound, bound)
            wihT.append(w_ih.T)
            whhT.append(w_hh.T)
            b.append(b_ih + b_hh)
        params.append((jnp.stack(wihT, 0), jnp.stack(whhT, 0), jnp.stack(b, 0)))
    return tuple(params)


# ----------------------------------------------------------------------------
# Pure-JAX reference (same packed-sequence semantics) for a sanity check
# ----------------------------------------------------------------------------
def _ref_dir(x, wihT, whhT, b, lens2d, reverse):
    T, B, _ = x.shape
    H = whhT.shape[0]
    h = jnp.zeros((B, H), jnp.float32)
    c = jnp.zeros((B, H), jnp.float32)
    out = jnp.zeros((T, B, H), jnp.float32)
    ts = range(T - 1, -1, -1) if reverse else range(T)
    for t in ts:
        gates = x[t] @ wihT + h @ whhT + b[None, :]
        i_g = jax.nn.sigmoid(gates[:, :H])
        f_g = jax.nn.sigmoid(gates[:, H:2 * H])
        g_g = jnp.tanh(gates[:, 2 * H:3 * H])
        o_g = jax.nn.sigmoid(gates[:, 3 * H:4 * H])
        c_new = f_g * c + i_g * g_g
        h_new = o_g * jnp.tanh(c_new)
        mask = t < lens2d
        h = jnp.where(mask, h_new, h)
        c = jnp.where(mask, c_new, c)
        out = out.at[t].set(jnp.where(mask, h_new, 0.0))
    return out, h, c


def ref_forward(embedded, seq_lens, params):
    T, B, _ = embedded.shape
    lens2d = jnp.asarray(seq_lens, jnp.int32).reshape(B, 1)
    x = embedded.astype(jnp.float32)
    hs, cs = [], []
    for (wihT_st, whhT_st, b_st) in params:
        outs = []
        for direction in range(2):
            o, hn, cn = _ref_dir(x, wihT_st[direction], whhT_st[direction],
                                 b_st[direction], lens2d, bool(direction))
            outs.append(o)
            hs.append(hn)
            cs.append(cn)
        x = jnp.concatenate(outs, axis=-1)
    return jnp.transpose(x, (1, 0, 2)), (jnp.stack(hs, 0), jnp.stack(cs, 0))


if __name__ == "__main__":
    # args implied by the module:
    LSTM_input_dim = 16
    LSTM_hidden_dim = 32
    LSTM_num_layers = 2

    T, B = 8, 2
    seq_lens = jnp.array([8, 5], jnp.int32)   # input_dict['seq_length_list']

    key = jax.random.PRNGKey(0)
    key, pkey, xkey = jax.random.split(key, 3)
    params = init_params(pkey, LSTM_input_dim, LSTM_hidden_dim, LSTM_num_layers)

    embedded = jax.random.normal(xkey, (T, B, LSTM_input_dim), jnp.float32)
    # zero out padded positions (what a real padded batch looks like)
    tmask = (jnp.arange(T)[:, None] < seq_lens[None, :])[:, :, None]
    embedded = embedded * tmask.astype(jnp.float32)

    output, (h_n, c_n) = custom_lstm_forward(embedded, seq_lens, params)
    jax.block_until_ready((output, h_n, c_n))

    ref_out, (ref_h, ref_c) = ref_forward(embedded, seq_lens, params)
    np.testing.assert_allclose(np.asarray(output), np.asarray(ref_out),
                               rtol=1e-4, atol=1e-4)
    np.testing.assert_allclose(np.asarray(h_n), np.asarray(ref_h),
                               rtol=1e-4, atol=1e-4)
    np.testing.assert_allclose(np.asarray(c_n), np.asarray(ref_c),
                               rtol=1e-4, atol=1e-4)

    assert output.shape == (B, T, 2 * LSTM_hidden_dim)
    assert h_n.shape == (LSTM_num_layers * 2, B, LSTM_hidden_dim)
    assert c_n.shape == (LSTM_num_layers * 2, B, LSTM_hidden_dim)

    print("KERNEL_OK")
</pallas_src>

<mosaic_0001>
module attributes {stable_mosaic.version = 11 : i64} {
  func.func @_bidir_lstm_kernel(%arg0: i32, %arg1: memref<8x2x128xf32, #tpu.memory_space<vmem>>, %arg2: memref<8x2x128xf32, #tpu.memory_space<vmem>>, %arg3: memref<32x128xf32, #tpu.memory_space<vmem>>, %arg4: memref<32x128xf32, #tpu.memory_space<vmem>>, %arg5: memref<2x1xi32, #tpu.memory_space<vmem>>, %arg6: memref<8x2x32xf32, #tpu.memory_space<vmem>>, %arg7: memref<8x2x32xf32, #tpu.memory_space<vmem>>, %arg8: memref<2x2x32xf32, #tpu.memory_space<vmem>>, %arg9: memref<2x2x32xf32, #tpu.memory_space<vmem>>) attributes {dimension_semantics = [#tpu.dimension_semantics<arbitrary>], iteration_bounds = array<i64: 1>, scalar_prefetch = 0 : i64, scratch_operands = 0 : i64, tpu.core_type = #tpu.core_type<tc>, window_params = [{transform_indices = @transform_0, window_bounds = array<i64: 8, 2, 128>}, {transform_indices = @transform_1, window_bounds = array<i64: 8, 2, 128>}, {pipeline_mode = #tpu.pipeline_mode<synchronous>, transform_indices = @transform_2, window_bounds = array<i64: 32, 128>}, {pipeline_mode = #tpu.pipeline_mode<synchronous>, transform_indices = @transform_3, window_bounds = array<i64: 32, 128>}, {pipeline_mode = #tpu.pipeline_mode<synchronous>, transform_indices = @transform_4, window_bounds = array<i64: 2, 1>}, {transform_indices = @transform_5, window_bounds = array<i64: 8, 2, 32>}, {transform_indices = @transform_6, window_bounds = array<i64: 8, 2, 32>}, {pipeline_mode = #tpu.pipeline_mode<synchronous>, transform_indices = @transform_7, window_bounds = array<i64: 2, 2, 32>}, {pipeline_mode = #tpu.pipeline_mode<synchronous>, transform_indices = @transform_8, window_bounds = array<i64: 2, 2, 32>}]} {
    %c0_i32 = arith.constant 0 : i32
    %0 = arith.cmpi eq, %arg0, %c0_i32 : i32
    %1 = arith.extui %0 : i1 to i32
    %c0_i32_0 = arith.constant 0 : i32
    %2 = arith.cmpi ne, %1, %c0_i32_0 : i32
    scf.if %2 {
      %cst_184 = arith.constant 0.000000e+00 : f32
      %789 = vector.broadcast %cst_184 : f32 to vector<2x2x32xf32>
      %c0_185 = arith.constant 0 : index
      %c0_186 = arith.constant 0 : index
      %c0_187 = arith.constant 0 : index
      %790 = vector.load %arg8[%c0_185, %c0_186, %c0_187] : memref<2x2x32xf32, #tpu.memory_space<vmem>>, vector<2x2x32xf32>
      tpu.vector_store %arg8[%c0_185, %c0_186, %c0_187], %789 {strides = array<i32>} : memref<2x2x32xf32, #tpu.memory_space<vmem>>, vector<2x2x32xf32>,
      %cst_188 = arith.constant 0.000000e+00 : f32
      %791 = vector.broadcast %cst_188 : f32 to vector<2x2x32xf32>
      %c0_189 = arith.constant 0 : index
      %c0_190 = arith.constant 0 : index
      %c0_191 = arith.constant 0 : index
      %792 = vector.load %arg9[%c0_189, %c0_190, %c0_191] : memref<2x2x32xf32, #tpu.memory_space<vmem>>, vector<2x2x32xf32>
      tpu.vector_store %arg9[%c0_189, %c0_190, %c0_191], %791 {strides = array<i32>} : memref<2x2x32xf32, #tpu.memory_space<vmem>>, vector<2x2x32xf32>,
    } else {
    }
    %c0 = arith.constant 0 : index
    %c0_1 = arith.constant 0 : index
    %3 = vector.load %arg3[%c0, %c0_1] : memref<32x128xf32, #tpu.memory_space<vmem>>, vector<32x128xf32>
    %c0_2 = arith.constant 0 : index
    %c0_3 = arith.constant 0 : index
    %4 = vector.load %arg4[%c0_2, %c0_3] : memref<32x128xf32, #tpu.memory_space<vmem>>, vector<32x128xf32>
    %c0_4 = arith.constant 0 : index
    %c0_5 = arith.constant 0 : index
    %5 = vector.load %arg5[%c0_4, %c0_5] : memref<2x1xi32, #tpu.memory_space<vmem>>, vector<2x1xi32>
    %c8_i32 = arith.constant 8 : i32
    %6 = arith.muli %arg0, %c8_i32 : i32
    %c0_i32_6 = arith.constant 0 : i32
    %7 = arith.subi %c0_i32_6, %arg0 : i32
    %c8_i32_7 = arith.constant 8 : i32
    %8 = arith.muli %7, %c8_i32_7 : i32
    %c0_8 = arith.constant 0 : index
    %c0_9 = arith.constant 0 : index
    %c0_10 = arith.constant 0 : index
    %9 = vector.load %arg8[%c0_8, %c0_9, %c0_10] : memref<2x2x32xf32, #tpu.memory_space<vmem>>, vector<1x2x32xf32>
    %10 = vector.shape_cast %9 : vector<1x2x32xf32> to vector<2x32xf32>
    %c0_11 = arith.constant 0 : index
    %c0_12 = arith.constant 0 : index
    %c0_13 = arith.constant 0 : index
    %11 = vector.load %arg9[%c0_11, %c0_12, %c0_13] : memref<2x2x32xf32, #tpu.memory_space<vmem>>, vector<1x2x32xf32>
    %12 = vector.shape_cast %11 : vector<1x2x32xf32> to vector<2x32xf32>
    %c1 = arith.constant 1 : index
    %c0_14 = arith.constant 0 : index
    %c0_15 = arith.constant 0 : index
    %13 = vector.load %arg8[%c1, %c0_14, %c0_15] : memref<2x2x32xf32, #tpu.memory_space<vmem>>, vector<1x2x32xf32>
    %14 = vector.shape_cast %13 : vector<1x2x32xf32> to vector<2x32xf32>
    %c1_16 = arith.constant 1 : index
    %c0_17 = arith.constant 0 : index
    %c0_18 = arith.constant 0 : index
    %15 = vector.load %arg9[%c1_16, %c0_17, %c0_18] : memref<2x2x32xf32, #tpu.memory_space<vmem>>, vector<1x2x32xf32>
    %16 = vector.shape_cast %15 : vector<1x2x32xf32> to vector<2x32xf32>
    %c0_i32_19 = arith.constant 0 : i32
    %c7_i32 = arith.constant 7 : i32
    %17 = arith.subi %c7_i32, %c0_i32_19 : i32
    %18 = arith.index_cast %c0_i32_19 : i32 to index
    %c0_20 = arith.constant 0 : index
    %c0_21 = arith.constant 0 : index
    %19 = vector.load %arg1[%18, %c0_20, %c0_21] : memref<8x2x128xf32, #tpu.memory_space<vmem>>, vector<1x2x128xf32>
    %20 = vector.shape_cast %19 : vector<1x2x128xf32> to vector<2x128xf32>
    %cst = arith.constant dense<0.000000e+00> : vector<2x128xf32>
    %21 = tpu.matmul %10, %3, %cst {dimension_numbers = #tpu.dot_dimension_numbers<[1], [0], [0], [1], [0, 0, 1, 1], [], []>} : vector<2x32xf32>, vector<32x128xf32>, vector<2x128xf32> -> vector<2x128xf32>
    %22 = arith.addf %20, %21 : vector<2x128xf32>
    %23 = arith.index_cast %17 : i32 to index
    %c0_22 = arith.constant 0 : index
    %c0_23 = arith.constant 0 : index
    %24 = vector.load %arg2[%23, %c0_22, %c0_23] : memref<8x2x128xf32, #tpu.memory_space<vmem>>, vector<1x2x128xf32>
    %25 = vector.shape_cast %24 : vector<1x2x128xf32> to vector<2x128xf32>
    %cst_24 = arith.constant dense<0.000000e+00> : vector<2x128xf32>
    %26 = tpu.matmul %14, %4, %cst_24 {dimension_numbers = #tpu.dot_dimension_numbers<[1], [0], [0], [1], [0, 0, 1, 1], [], []>} : vector<2x32xf32>, vector<32x128xf32>, vector<2x128xf32> -> vector<2x128xf32>
    %27 = arith.addf %25, %26 : vector<2x128xf32>
    %28 = vector.extract_strided_slice %22 {offsets = [0, 0], sizes = [2, 32], strides = [1, 1]} : vector<2x128xf32> to vector<2x32xf32>
    %29 = arith.negf %28 : vector<2x32xf32>
    %30 = math.exp %29 : vector<2x32xf32>
    %cst_25 = arith.constant 1.000000e+00 : f32
    %31 = vector.broadcast %cst_25 : f32 to vector<2x32xf32>
    %32 = arith.addf %31, %30 : vector<2x32xf32>
    %33 = arith.divf %31, %32 : vector<2x32xf32>
    %34 = vector.extract_strided_slice %22 {offsets = [0, 32], sizes = [2, 32], strides = [1, 1]} : vector<2x128xf32> to vector<2x32xf32>
    %35 = arith.negf %34 : vector<2x32xf32>
    %36 = math.exp %35 : vector<2x32xf32>
    %cst_26 = arith.constant 1.000000e+00 : f32
    %37 = vector.broadcast %cst_26 : f32 to vector<2x32xf32>
    %38 = arith.addf %37, %36 : vector<2x32xf32>
    %39 = arith.divf %37, %38 : vector<2x32xf32>
    %40 = vector.extract_strided_slice %22 {offsets = [0, 64], sizes = [2, 32], strides = [1, 1]} : vector<2x128xf32> to vector<2x32xf32>
    %41 = math.tanh %40 : vector<2x32xf32>
    %42 = vector.extract_strided_slice %22 {offsets = [0, 96], sizes = [2, 32], strides = [1, 1]} : vector<2x128xf32> to vector<2x32xf32>
    %43 = arith.negf %42 : vector<2x32xf32>
    %44 = math.exp %43 : vector<2x32xf32>
    %cst_27 = arith.constant 1.000000e+00 : f32
    %45 = vector.broadcast %cst_27 : f32 to vector<2x32xf32>
    %46 = arith.addf %45, %44 : vector<2x32xf32>
    %47 = arith.divf %45, %46 : vector<2x32xf32>
    %48 = arith.mulf %39, %12 : vector<2x32xf32>
    %49 = arith.mulf %33, %41 : vector<2x32xf32>
    %50 = arith.addf %48, %49 : vector<2x32xf32>
    %51 = math.tanh %50 : vector<2x32xf32>
    %52 = arith.mulf %47, %51 : vector<2x32xf32>
    %53 = vector.extract_strided_slice %27 {offsets = [0, 0], sizes = [2, 32], strides = [1, 1]} : vector<2x128xf32> to vector<2x32xf32>
    %54 = arith.negf %53 : vector<2x32xf32>
    %55 = math.exp %54 : vector<2x32xf32>
    %cst_28 = arith.constant 1.000000e+00 : f32
    %56 = vector.broadcast %cst_28 : f32 to vector<2x32xf32>
    %57 = arith.addf %56, %55 : vector<2x32xf32>
    %58 = arith.divf %56, %57 : vector<2x32xf32>
    %59 = vector.extract_strided_slice %27 {offsets = [0, 32], sizes = [2, 32], strides = [1, 1]} : vector<2x128xf32> to vector<2x32xf32>
    %60 = arith.negf %59 : vector<2x32xf32>
    %61 = math.exp %60 : vector<2x32xf32>
    %cst_29 = arith.constant 1.000000e+00 : f32
    %62 = vector.broadcast %cst_29 : f32 to vector<2x32xf32>
    %63 = arith.addf %62, %61 : vector<2x32xf32>
    %64 = arith.divf %62, %63 : vector<2x32xf32>
    %65 = vector.extract_strided_slice %27 {offsets = [0, 64], sizes = [2, 32], strides = [1, 1]} : vector<2x128xf32> to vector<2x32xf32>
    %66 = math.tanh %65 : vector<2x32xf32>
    %67 = vector.extract_strided_slice %27 {offsets = [0, 96], sizes = [2, 32], strides = [1, 1]} : vector<2x128xf32> to vector<2x32xf32>
    %68 = arith.negf %67 : vector<2x32xf32>
    %69 = math.exp %68 : vector<2x32xf32>
    %cst_30 = arith.constant 1.000000e+00 : f32
    %70 = vector.broadcast %cst_30 : f32 to vector<2x32xf32>
    %71 = arith.addf %70, %69 : vector<2x32xf32>
    %72 = arith.divf %70, %71 : vector<2x32xf32>
    %73 = arith.mulf %64, %16 : vector<2x32xf32>
    %74 = arith.mulf %58, %66 : vector<2x32xf32>
    %75 = arith.addf %73, %74 : vector<2x32xf32>
    %76 = math.tanh %75 : vector<2x32xf32>
    %77 = arith.mulf %72, %76 : vector<2x32xf32>
    %78 = arith.addi %6, %c0_i32_19 : i32
    %79 = vector.broadcast %78 : i32 to vector<2x1xi32>
    %80 = arith.cmpi slt, %79, %5 : vector<2x1xi32>
    %81 = arith.addi %8, %17 : i32
    %82 = vector.broadcast %81 : i32 to vector<2x1xi32>
    %83 = arith.cmpi slt, %82, %5 : vector<2x1xi32>
    %cst_31 = arith.constant 0.000000e+00 : f32
    %84 = vector.shape_cast %80 : vector<2x1xi1> to vector<2x1xi1>
    %85 = vector.broadcast %84 : vector<2x1xi1> to vector<2x32xi1>
    %86 = vector.broadcast %cst_31 : f32 to vector<2x32xf32>
    %87 = arith.select %85, %52, %86 : vector<2x32xi1>, vector<2x32xf32>
    %88 = arith.index_cast %c0_i32_19 : i32 to index
    %c0_32 = arith.constant 0 : index
    %c0_33 = arith.constant 0 : index
    %89 = vector.load %arg6[%88, %c0_32, %c0_33] : memref<8x2x32xf32, #tpu.memory_space<vmem>>, vector<1x2x32xf32>
    %90 = vector.shape_cast %89 : vector<1x2x32xf32> to vector<2x32xf32>
    %91 = vector.shape_cast %87 : vector<2x32xf32> to vector<1x2x32xf32>
    tpu.vector_store %arg6[%88, %c0_32, %c0_33], %91 {strides = array<i32>} : memref<8x2x32xf32, #tpu.memory_space<vmem>>, vector<1x2x32xf32>,
    %cst_34 = arith.constant 0.000000e+00 : f32
    %92 = vector.shape_cast %83 : vector<2x1xi1> to vector<2x1xi1>
    %93 = vector.broadcast %92 : vector<2x1xi1> to vector<2x32xi1>
    %94 = vector.broadcast %cst_34 : f32 to vector<2x32xf32>
    %95 = arith.select %93, %77, %94 : vector<2x32xi1>, vector<2x32xf32>
    %96 = arith.index_cast %17 : i32 to index
    %c0_35 = arith.constant 0 : index
    %c0_36 = arith.constant 0 : index
    %97 = vector.load %arg7[%96, %c0_35, %c0_36] : memref<8x2x32xf32, #tpu.memory_space<vmem>>, vector<1x2x32xf32>
    %98 = vector.shape_cast %97 : vector<1x2x32xf32> to vector<2x32xf32>
    %99 = vector.shape_cast %95 : vector<2x32xf32> to vector<1x2x32xf32>
    tpu.vector_store %arg7[%96, %c0_35, %c0_36], %99 {strides = array<i32>} : memref<8x2x32xf32, #tpu.memory_space<vmem>>, vector<1x2x32xf32>,
    %100 = vector.shape_cast %80 : vector<2x1xi1> to vector<2x1xi1>
    %101 = vector.broadcast %100 : vector<2x1xi1> to vector<2x32xi1>
    %102 = arith.select %101, %52, %10 : vector<2x32xi1>, vector<2x32xf32>
    %103 = vector.shape_cast %80 : vector<2x1xi1> to vector<2x1xi1>
    %104 = vector.broadcast %103 : vector<2x1xi1> to vector<2x32xi1>
    %105 = arith.select %104, %50, %12 : vector<2x32xi1>, vector<2x32xf32>
    %106 = vector.shape_cast %83 : vector<2x1xi1> to vector<2x1xi1>
    %107 = vector.broadcast %106 : vector<2x1xi1> to vector<2x32xi1>
    %108 = arith.select %107, %77, %14 : vector<2x32xi1>, vector<2x32xf32>
    %109 = vector.shape_cast %83 : vector<2x1xi1> to vector<2x1xi1>
    %110 = vector.broadcast %109 : vector<2x1xi1> to vector<2x32xi1>
    %111 = arith.select %110, %75, %16 : vector<2x32xi1>, vector<2x32xf32>
    %c1_i32 = arith.constant 1 : i32
    %c7_i32_37 = arith.constant 7 : i32
    %112 = arith.subi %c7_i32_37, %c1_i32 : i32
    %113 = arith.index_cast %c1_i32 : i32 to index
    %c0_38 = arith.constant 0 : index
    %c0_39 = arith.constant 0 : index
    %114 = vector.load %arg1[%113, %c0_38, %c0_39] : memref<8x2x128xf32, #tpu.memory_space<vmem>>, vector<1x2x128xf32>
    %115 = vector.shape_cast %114 : vector<1x2x128xf32> to vector<2x128xf32>
    %cst_40 = arith.constant dense<0.000000e+00> : vector<2x128xf32>
    %116 = tpu.matmul %102, %3, %cst_40 {dimension_numbers = #tpu.dot_dimension_numbers<[1], [0], [0], [1], [0, 0, 1, 1], [], []>} : vector<2x32xf32>, vector<32x128xf32>, vector<2x128xf32> -> vector<2x128xf32>
    %117 = arith.addf %115, %116 : vector<2x128xf32>
    %118 = arith.index_cast %112 : i32 to index
    %c0_41 = arith.constant 0 : index
    %c0_42 = arith.constant 0 : index
    %119 = vector.load %arg2[%118, %c0_41, %c0_42] : memref<8x2x128xf32, #tpu.memory_space<vmem>>, vector<1x2x128xf32>
    %120 = vector.shape_cast %119 : vector<1x2x128xf32> to vector<2x128xf32>
    %cst_43 = arith.constant dense<0.000000e+00> : vector<2x128xf32>
    %121 = tpu.matmul %108, %4, %cst_43 {dimension_numbers = #tpu.dot_dimension_numbers<[1], [0], [0], [1], [0, 0, 1, 1], [], []>} : vector<2x32xf32>, vector<32x128xf32>, vector<2x128xf32> -> vector<2x128xf32>
    %122 = arith.addf %120, %121 : vector<2x128xf32>
    %123 = vector.extract_strided_slice %117 {offsets = [0, 0], sizes = [2, 32], strides = [1, 1]} : vector<2x128xf32> to vector<2x32xf32>
    %124 = arith.negf %123 : vector<2x32xf32>
    %125 = math.exp %124 : vector<2x32xf32>
    %cst_44 = arith.constant 1.000000e+00 : f32
    %126 = vector.broadcast %cst_44 : f32 to vector<2x32xf32>
    %127 = arith.addf %126, %125 : vector<2x32xf32>
    %128 = arith.divf %126, %127 : vector<2x32xf32>
    %129 = vector.extract_strided_slice %117 {offsets = [0, 32], sizes = [2, 32], strides = [1, 1]} : vector<2x128xf32> to vector<2x32xf32>
    %130 = arith.negf %129 : vector<2x32xf32>
    %131 = math.exp %130 : vector<2x32xf32>
    %cst_45 = arith.constant 1.000000e+00 : f32
    %132 = vector.broadcast %cst_45 : f32 to vector<2x32xf32>
    %133 = arith.addf %132, %131 : vector<2x32xf32>
    %134 = arith.divf %132, %133 : vector<2x32xf32>
    %135 = vector.extract_strided_slice %117 {offsets = [0, 64], sizes = [2, 32], strides = [1, 1]} : vector<2x128xf32> to vector<2x32xf32>
    %136 = math.tanh %135 : vector<2x32xf32>
    %137 = vector.extract_strided_slice %117 {offsets = [0, 96], sizes = [2, 32], strides = [1, 1]} : vector<2x128xf32> to vector<2x32xf32>
    %138 = arith.negf %137 : vector<2x32xf32>
    %139 = math.exp %138 : vector<2x32xf32>
    %cst_46 = arith.constant 1.000000e+00 : f32
    %140 = vector.broadcast %cst_46 : f32 to vector<2x32xf32>
    %141 = arith.addf %140, %139 : vector<2x32xf32>
    %142 = arith.divf %140, %141 : vector<2x32xf32>
    %143 = arith.mulf %134, %105 : vector<2x32xf32>
    %144 = arith.mulf %128, %136 : vector<2x32xf32>
    %145 = arith.addf %143, %144 : vector<2x32xf32>
    %146 = math.tanh %145 : vector<2x32xf32>
    %147 = arith.mulf %142, %146 : vector<2x32xf32>
    %148 = vector.extract_strided_slice %122 {offsets = [0, 0], sizes = [2, 32], strides = [1, 1]} : vector<2x128xf32> to vector<2x32xf32>
    %149 = arith.negf %148 : vector<2x32xf32>
    %150 = math.exp %149 : vector<2x32xf32>
    %cst_47 = arith.constant 1.000000e+00 : f32
    %151 = vector.broadcast %cst_47 : f32 to vector<2x32xf32>
    %152 = arith.addf %151, %150 : vector<2x32xf32>
    %153 = arith.divf %151, %152 : vector<2x32xf32>
    %154 = vector.extract_strided_slice %122 {offsets = [0, 32], sizes = [2, 32], strides = [1, 1]} : vector<2x128xf32> to vector<2x32xf32>
    %155 = arith.negf %154 : vector<2x32xf32>
    %156 = math.exp %155 : vector<2x32xf32>
    %cst_48 = arith.constant 1.000000e+00 : f32
    %157 = vector.broadcast %cst_48 : f32 to vector<2x32xf32>
    %158 = arith.addf %157, %156 : vector<2x32xf32>
    %159 = arith.divf %157, %158 : vector<2x32xf32>
    %160 = vector.extract_strided_slice %122 {offsets = [0, 64], sizes = [2, 32], strides = [1, 1]} : vector<2x128xf32> to vector<2x32xf32>
    %161 = math.tanh %160 : vector<2x32xf32>
    %162 = vector.extract_strided_slice %122 {offsets = [0, 96], sizes = [2, 32], strides = [1, 1]} : vector<2x128xf32> to vector<2x32xf32>
    %163 = arith.negf %162 : vector<2x32xf32>
    %164 = math.exp %163 : vector<2x32xf32>
    %cst_49 = arith.constant 1.000000e+00 : f32
    %165 = vector.broadcast %cst_49 : f32 to vector<2x32xf32>
    %166 = arith.addf %165, %164 : vector<2x32xf32>
    %167 = arith.divf %165, %166 : vector<2x32xf32>
    %168 = arith.mulf %159, %111 : vector<2x32xf32>
    %169 = arith.mulf %153, %161 : vector<2x32xf32>
    %170 = arith.addf %168, %169 : vector<2x32xf32>
    %171 = math.tanh %170 : vector<2x32xf32>
    %172 = arith.mulf %167, %171 : vector<2x32xf32>
    %173 = arith.addi %6, %c1_i32 : i32
    %174 = vector.broadcast %173 : i32 to vector<2x1xi32>
    %175 = arith.cmpi slt, %174, %5 : vector<2x1xi32>
    %176 = arith.addi %8, %112 : i32
    %177 = vector.broadcast %176 : i32 to vector<2x1xi32>
    %178 = arith.cmpi slt, %177, %5 : vector<2x1xi32>
    %cst_50 = arith.constant 0.000000e+00 : f32
    %179 = vector.shape_cast %175 : vector<2x1xi1> to vector<2x1xi1>
    %180 = vector.broadcast %179 : vector<2x1xi1> to vector<2x32xi1>
    %181 = vector.broadcast %cst_50 : f32 to vector<2x32xf32>
    %182 = arith.select %180, %147, %181 : vector<2x32xi1>, vector<2x32xf32>
    %183 = arith.index_cast %c1_i32 : i32 to index
    %c0_51 = arith.constant 0 : index
    %c0_52 = arith.constant 0 : index
    %184 = vector.load %arg6[%183, %c0_51, %c0_52] : memref<8x2x32xf32, #tpu.memory_space<vmem>>, vector<1x2x32xf32>
    %185 = vector.shape_cast %184 : vector<1x2x32xf32> to vector<2x32xf32>
    %186 = vector.shape_cast %182 : vector<2x32xf32> to vector<1x2x32xf32>
    tpu.vector_store %arg6[%183, %c0_51, %c0_52], %186 {strides = array<i32>} : memref<8x2x32xf32, #tpu.memory_space<vmem>>, vector<1x2x32xf32>,
    %cst_53 = arith.constant 0.000000e+00 : f32
    %187 = vector.shape_cast %178 : vector<2x1xi1> to vector<2x1xi1>
    %188 = vector.broadcast %187 : vector<2x1xi1> to vector<2x32xi1>
    %189 = vector.broadcast %cst_53 : f32 to vector<2x32xf32>
    %190 = arith.select %188, %172, %189 : vector<2x32xi1>, vector<2x32xf32>
    %191 = arith.index_cast %112 : i32 to index
    %c0_54 = arith.constant 0 : index
    %c0_55 = arith.constant 0 : index
    %192 = vector.load %arg7[%191, %c0_54, %c0_55] : memref<8x2x32xf32, #tpu.memory_space<vmem>>, vector<1x2x32xf32>
    %193 = vector.shape_cast %192 : vector<1x2x32xf32> to vector<2x32xf32>
    %194 = vector.shape_cast %190 : vector<2x32xf32> to vector<1x2x32xf32>
    tpu.vector_store %arg7[%191, %c0_54, %c0_55], %194 {strides = array<i32>} : memref<8x2x32xf32, #tpu.memory_space<vmem>>, vector<1x2x32xf32>,
    %195 = vector.shape_cast %175 : vector<2x1xi1> to vector<2x1xi1>
    %196 = vector.broadcast %195 : vector<2x1xi1> to vector<2x32xi1>
    %197 = arith.select %196, %147, %102 : vector<2x32xi1>, vector<2x32xf32>
    %198 = vector.shape_cast %175 : vector<2x1xi1> to vector<2x1xi1>
    %199 = vector.broadcast %198 : vector<2x1xi1> to vector<2x32xi1>
    %200 = arith.select %199, %145, %105 : vector<2x32xi1>, vector<2x32xf32>
    %201 = vector.shape_cast %178 : vector<2x1xi1> to vector<2x1xi1>
    %202 = vector.broadcast %201 : vector<2x1xi1> to vector<2x32xi1>
    %203 = arith.select %202, %172, %108 : vector<2x32xi1>, vector<2x32xf32>
    %204 = vector.shape_cast %178 : vector<2x1xi1> to vector<2x1xi1>
    %205 = vector.broadcast %204 : vector<2x1xi1> to vector<2x32xi1>
    %206 = arith.select %205, %170, %111 : vector<2x32xi1>, vector<2x32xf32>
    %c2_i32 = arith.constant 2 : i32
    %c7_i32_56 = arith.constant 7 : i32
    %207 = arith.subi %c7_i32_56, %c2_i32 : i32
    %208 = arith.index_cast %c2_i32 : i32 to index
    %c0_57 = arith.constant 0 : index
    %c0_58 = arith.constant 0 : index
    %209 = vector.load %arg1[%208, %c0_57, %c0_58] : memref<8x2x128xf32, #tpu.memory_space<vmem>>, vector<1x2x128xf32>
    %210 = vector.shape_cast %209 : vector<1x2x128xf32> to vector<2x128xf32>
    %cst_59 = arith.constant dense<0.000000e+00> : vector<2x128xf32>
    %211 = tpu.matmul %197, %3, %cst_59 {dimension_numbers = #tpu.dot_dimension_numbers<[1], [0], [0], [1], [0, 0, 1, 1], [], []>} : vector<2x32xf32>, vector<32x128xf32>, vector<2x128xf32> -> vector<2x128xf32>
    %212 = arith.addf %210, %211 : vector<2x128xf32>
    %213 = arith.index_cast %207 : i32 to index
    %c0_60 = arith.constant 0 : index
    %c0_61 = arith.constant 0 : index
    %214 = vector.load %arg2[%213, %c0_60, %c0_61] : memref<8x2x128xf32, #tpu.memory_space<vmem>>, vector<1x2x128xf32>
    %215 = vector.shape_cast %214 : vector<1x2x128xf32> to vector<2x128xf32>
    %cst_62 = arith.constant dense<0.000000e+00> : vector<2x128xf32>
    %216 = tpu.matmul %203, %4, %cst_62 {dimension_numbers = #tpu.dot_dimension_numbers<[1], [0], [0], [1], [0, 0, 1, 1], [], []>} : vector<2x32xf32>, vector<32x128xf32>, vector<2x128xf32> -> vector<2x128xf32>
    %217 = arith.addf %215, %216 : vector<2x128xf32>
    %218 = vector.extract_strided_slice %212 {offsets = [0, 0], sizes = [2, 32], strides = [1, 1]} : vector<2x128xf32> to vector<2x32xf32>
    %219 = arith.negf %218 : vector<2x32xf32>
    %220 = math.exp %219 : vector<2x32xf32>
    %cst_63 = arith.constant 1.000000e+00 : f32
    %221 = vector.broadcast %cst_63 : f32 to vector<2x32xf32>
    %222 = arith.addf %221, %220 : vector<2x32xf32>
    %223 = arith.divf %221, %222 : vector<2x32xf32>
    %224 = vector.extract_strided_slice %212 {offsets = [0, 32], sizes = [2, 32], strides = [1, 1]} : vector<2x128xf32> to vector<2x32xf32>
    %225 = arith.negf %224 : vector<2x32xf32>
    %226 = math.exp %225 : vector<2x32xf32>
    %cst_64 = arith.constant 1.000000e+00 : f32
    %227 = vector.broadcast %cst_64 : f32 to vector<2x32xf32>
    %228 = arith.addf %227, %226 : vector<2x32xf32>
    %229 = arith.divf %227, %228 : vector<2x32xf32>
    %230 = vector.extract_strided_slice %212 {offsets = [0, 64], sizes = [2, 32], strides = [1, 1]} : vector<2x128xf32> to vector<2x32xf32>
    %231 = math.tanh %230 : vector<2x32xf32>
    %232 = vector.extract_strided_slice %212 {offsets = [0, 96], sizes = [2, 32], strides = [1, 1]} : vector<2x128xf32> to vector<2x32xf32>
    %233 = arith.negf %232 : vector<2x32xf32>
    %234 = math.exp %233 : vector<2x32xf32>
    %cst_65 = arith.constant 1.000000e+00 : f32
    %235 = vector.broadcast %cst_65 : f32 to vector<2x32xf32>
    %236 = arith.addf %235, %234 : vector<2x32xf32>
    %237 = arith.divf %235, %236 : vector<2x32xf32>
    %238 = arith.mulf %229, %200 : vector<2x32xf32>
    %239 = arith.mulf %223, %231 : vector<2x32xf32>
    %240 = arith.addf %238, %239 : vector<2x32xf32>
    %241 = math.tanh %240 : vector<2x32xf32>
    %242 = arith.mulf %237, %241 : vector<2x32xf32>
    %243 = vector.extract_strided_slice %217 {offsets = [0, 0], sizes = [2, 32], strides = [1, 1]} : vector<2x128xf32> to vector<2x32xf32>
    %244 = arith.negf %243 : vector<2x32xf32>
    %245 = math.exp %244 : vector<2x32xf32>
    %cst_66 = arith.constant 1.000000e+00 : f32
    %246 = vector.broadcast %cst_66 : f32 to vector<2x32xf32>
    %247 = arith.addf %246, %245 : vector<2x32xf32>
    %248 = arith.divf %246, %247 : vector<2x32xf32>
    %249 = vector.extract_strided_slice %217 {offsets = [0, 32], sizes = [2, 32], strides = [1, 1]} : vector<2x128xf32> to vector<2x32xf32>
    %250 = arith.negf %249 : vector<2x32xf32>
    %251 = math.exp %250 : vector<2x32xf32>
    %cst_67 = arith.constant 1.000000e+00 : f32
    %252 = vector.broadcast %cst_67 : f32 to vector<2x32xf32>
    %253 = arith.addf %252, %251 : vector<2x32xf32>
    %254 = arith.divf %252, %253 : vector<2x32xf32>
    %255 = vector.extract_strided_slice %217 {offsets = [0, 64], sizes = [2, 32], strides = [1, 1]} : vector<2x128xf32> to vector<2x32xf32>
    %256 = math.tanh %255 : vector<2x32xf32>
    %257 = vector.extract_strided_slice %217 {offsets = [0, 96], sizes = [2, 32], strides = [1, 1]} : vector<2x128xf32> to vector<2x32xf32>
    %258 = arith.negf %257 : vector<2x32xf32>
    %259 = math.exp %258 : vector<2x32xf32>
    %cst_68 = arith.constant 1.000000e+00 : f32
    %260 = vector.broadcast %cst_68 : f32 to vector<2x32xf32>
    %261 = arith.addf %260, %259 : vector<2x32xf32>
    %262 = arith.divf %260, %261 : vector<2x32xf32>
    %263 = arith.mulf %254, %206 : vector<2x32xf32>
    %264 = arith.mulf %248, %256 : vector<2x32xf32>
    %265 = arith.addf %263, %264 : vector<2x32xf32>
    %266 = math.tanh %265 : vector<2x32xf32>
    %267 = arith.mulf %262, %266 : vector<2x32xf32>
    %268 = arith.addi %6, %c2_i32 : i32
    %269 = vector.broadcast %268 : i32 to vector<2x1xi32>
    %270 = arith.cmpi slt, %269, %5 : vector<2x1xi32>
    %271 = arith.addi %8, %207 : i32
    %272 = vector.broadcast %271 : i32 to vector<2x1xi32>
    %273 = arith.cmpi slt, %272, %5 : vector<2x1xi32>
    %cst_69 = arith.constant 0.000000e+00 : f32
    %274 = vector.shape_cast %270 : vector<2x1xi1> to vector<2x1xi1>
    %275 = vector.broadcast %274 : vector<2x1xi1> to vector<2x32xi1>
    %276 = vector.broadcast %cst_69 : f32 to vector<2x32xf32>
    %277 = arith.select %275, %242, %276 : vector<2x32xi1>, vector<2x32xf32>
    %278 = arith.index_cast %c2_i32 : i32 to index
    %c0_70 = arith.constant 0 : index
    %c0_71 = arith.constant 0 : index
    %279 = vector.load %arg6[%278, %c0_70, %c0_71] : memref<8x2x32xf32, #tpu.memory_space<vmem>>, vector<1x2x32xf32>
    %280 = vector.shape_cast %279 : vector<1x2x32xf32> to vector<2x32xf32>
    %281 = vector.shape_cast %277 : vector<2x32xf32> to vector<1x2x32xf32>
    tpu.vector_store %arg6[%278, %c0_70, %c0_71], %281 {strides = array<i32>} : memref<8x2x32xf32, #tpu.memory_space<vmem>>, vector<1x2x32xf32>,
    %cst_72 = arith.constant 0.000000e+00 : f32
    %282 = vector.shape_cast %273 : vector<2x1xi1> to vector<2x1xi1>
    %283 = vector.broadcast %282 : vector<2x1xi1> to vector<2x32xi1>
    %284 = vector.broadcast %cst_72 : f32 to vector<2x32xf32>
    %285 = arith.select %283, %267, %284 : vector<2x32xi1>, vector<2x32xf32>
    %286 = arith.index_cast %207 : i32 to index
    %c0_73 = arith.constant 0 : index
    %c0_74 = arith.constant 0 : index
    %287 = vector.load %arg7[%286, %c0_73, %c0_74] : memref<8x2x32xf32, #tpu.memory_space<vmem>>, vector<1x2x32xf32>
    %288 = vector.shape_cast %287 : vector<1x2x32xf32> to vector<2x32xf32>
    %289 = vector.shape_cast %285 : vector<2x32xf32> to vector<1x2x32xf32>
    tpu.vector_store %arg7[%286, %c0_73, %c0_74], %289 {strides = array<i32>} : memref<8x2x32xf32, #tpu.memory_space<vmem>>, vector<1x2x32xf32>,
    %290 = vector.shape_cast %270 : vector<2x1xi1> to vector<2x1xi1>
    %291 = vector.broadcast %290 : vector<2x1xi1> to vector<2x32xi1>
    %292 = arith.select %291, %242, %197 : vector<2x32xi1>, vector<2x32xf32>
    %293 = vector.shape_cast %270 : vector<2x1xi1> to vector<2x1xi1>
    %294 = vector.broadcast %293 : vector<2x1xi1> to vector<2x32xi1>
    %295 = arith.select %294, %240, %200 : vector<2x32xi1>, vector<2x32xf32>
    %296 = vector.shape_cast %273 : vector<2x1xi1> to vector<2x1xi1>
    %297 = vector.broadcast %296 : vector<2x1xi1> to vector<2x32xi1>
    %298 = arith.select %297, %267, %203 : vector<2x32xi1>, vector<2x32xf32>
    %299 = vector.shape_cast %273 : vector<2x1xi1> to vector<2x1xi1>
    %300 = vector.broadcast %299 : vector<2x1xi1> to vector<2x32xi1>
    %301 = arith.select %300, %265, %206 : vector<2x32xi1>, vector<2x32xf32>
    %c3_i32 = arith.constant 3 : i32
    %c7_i32_75 = arith.constant 7 : i32
    %302 = arith.subi %c7_i32_75, %c3_i32 : i32
    %303 = arith.index_cast %c3_i32 : i32 to index
    %c0_76 = arith.constant 0 : index
    %c0_77 = arith.constant 0 : index
    %304 = vector.load %arg1[%303, %c0_76, %c0_77] : memref<8x2x128xf32, #tpu.memory_space<vmem>>, vector<1x2x128xf32>
    %305 = vector.shape_cast %304 : vector<1x2x128xf32> to vector<2x128xf32>
    %cst_78 = arith.constant dense<0.000000e+00> : vector<2x128xf32>
    %306 = tpu.matmul %292, %3, %cst_78 {dimension_numbers = #tpu.dot_dimension_numbers<[1], [0], [0], [1], [0, 0, 1, 1], [], []>} : vector<2x32xf32>, vector<32x128xf32>, vector<2x128xf32> -> vector<2x128xf32>
    %307 = arith.addf %305, %306 : vector<2x128xf32>
    %308 = arith.index_cast %302 : i32 to index
    %c0_79 = arith.constant 0 : index
    %c0_80 = arith.constant 0 : index
    %309 = vector.load %arg2[%308, %c0_79, %c0_80] : memref<8x2x128xf32, #tpu.memory_space<vmem>>, vector<1x2x128xf32>
    %310 = vector.shape_cast %309 : vector<1x2x128xf32> to vector<2x128xf32>
    %cst_81 = arith.constant dense<0.000000e+00> : vector<2x128xf32>
    %311 = tpu.matmul %298, %4, %cst_81 {dimension_numbers = #tpu.dot_dimension_numbers<[1], [0], [0], [1], [0, 0, 1, 1], [], []>} : vector<2x32xf32>, vector<32x128xf32>, vector<2x128xf32> -> vector<2x128xf32>
    %312 = arith.addf %310, %311 : vector<2x128xf32>
    %313 = vector.extract_strided_slice %307 {offsets = [0, 0], sizes = [2, 32], strides = [1, 1]} : vector<2x128xf32> to vector<2x32xf32>
    %314 = arith.negf %313 : vector<2x32xf32>
    %315 = math.exp %314 : vector<2x32xf32>
    %cst_82 = arith.constant 1.000000e+00 : f32
    %316 = vector.broadcast %cst_82 : f32 to vector<2x32xf32>
    %317 = arith.addf %316, %315 : vector<2x32xf32>
    %318 = arith.divf %316, %317 : vector<2x32xf32>
    %319 = vector.extract_strided_slice %307 {offsets = [0, 32], sizes = [2, 32], strides = [1, 1]} : vector<2x128xf32> to vector<2x32xf32>
    %320 = arith.negf %319 : vector<2x32xf32>
    %321 = math.exp %320 : vector<2x32xf32>
    %cst_83 = arith.constant 1.000000e+00 : f32
    %322 = vector.broadcast %cst_83 : f32 to vector<2x32xf32>
    %323 = arith.addf %322, %321 : vector<2x32xf32>
    %324 = arith.divf %322, %323 : vector<2x32xf32>
    %325 = vector.extract_strided_slice %307 {offsets = [0, 64], sizes = [2, 32], strides = [1, 1]} : vector<2x128xf32> to vector<2x32xf32>
    %326 = math.tanh %325 : vector<2x32xf32>
    %327 = vector.extract_strided_slice %307 {offsets = [0, 96], sizes = [2, 32], strides = [1, 1]} : vector<2x128xf32> to vector<2x32xf32>
    %328 = arith.negf %327 : vector<2x32xf32>
    %329 = math.exp %328 : vector<2x32xf32>
    %cst_84 = arith.constant 1.000000e+00 : f32
    %330 = vector.broadcast %cst_84 : f32 to vector<2x32xf32>
    %331 = arith.addf %330, %329 : vector<2x32xf32>
    %332 = arith.divf %330, %331 : vector<2x32xf32>
    %333 = arith.mulf %324, %295 : vector<2x32xf32>
    %334 = arith.mulf %318, %326 : vector<2x32xf32>
    %335 = arith.addf %333, %334 : vector<2x32xf32>
    %336 = math.tanh %335 : vector<2x32xf32>
    %337 = arith.mulf %332, %336 : vector<2x32xf32>
    %338 = vector.extract_strided_slice %312 {offsets = [0, 0], sizes = [2, 32], strides = [1, 1]} : vector<2x128xf32> to vector<2x32xf32>
    %339 = arith.negf %338 : vector<2x32xf32>
    %340 = math.exp %339 : vector<2x32xf32>
    %cst_85 = arith.constant 1.000000e+00 : f32
    %341 = vector.broadcast %cst_85 : f32 to vector<2x32xf32>
    %342 = arith.addf %341, %340 : vector<2x32xf32>
    %343 = arith.divf %341, %342 : vector<2x32xf32>
    %344 = vector.extract_strided_slice %312 {offsets = [0, 32], sizes = [2, 32], strides = [1, 1]} : vector<2x128xf32> to vector<2x32xf32>
    %345 = arith.negf %344 : vector<2x32xf32>
    %346 = math.exp %345 : vector<2x32xf32>
    %cst_86 = arith.constant 1.000000e+00 : f32
    %347 = vector.broadcast %cst_86 : f32 to vector<2x32xf32>
    %348 = arith.addf %347, %346 : vector<2x32xf32>
    %349 = arith.divf %347, %348 : vector<2x32xf32>
    %350 = vector.extract_strided_slice %312 {offsets = [0, 64], sizes = [2, 32], strides = [1, 1]} : vector<2x128xf32> to vector<2x32xf32>
    %351 = math.tanh %350 : vector<2x32xf32>
    %352 = vector.extract_strided_slice %312 {offsets = [0, 96], sizes = [2, 32], strides = [1, 1]} : vector<2x128xf32> to vector<2x32xf32>
    %353 = arith.negf %352 : vector<2x32xf32>
    %354 = math.exp %353 : vector<2x32xf32>
    %cst_87 = arith.constant 1.000000e+00 : f32
    %355 = vector.broadcast %cst_87 : f32 to vector<2x32xf32>
    %356 = arith.addf %355, %354 : vector<2x32xf32>
    %357 = arith.divf %355, %356 : vector<2x32xf32>
    %358 = arith.mulf %349, %301 : vector<2x32xf32>
    %359 = arith.mulf %343, %351 : vector<2x32xf32>
    %360 = arith.addf %358, %359 : vector<2x32xf32>
    %361 = math.tanh %360 : vector<2x32xf32>
    %362 = arith.mulf %357, %361 : vector<2x32xf32>
    %363 = arith.addi %6, %c3_i32 : i32
    %364 = vector.broadcast %363 : i32 to vector<2x1xi32>
    %365 = arith.cmpi slt, %364, %5 : vector<2x1xi32>
    %366 = arith.addi %8, %302 : i32
    %367 = vector.broadcast %366 : i32 to vector<2x1xi32>
    %368 = arith.cmpi slt, %367, %5 : vector<2x1xi32>
    %cst_88 = arith.constant 0.000000e+00 : f32
    %369 = vector.shape_cast %365 : vector<2x1xi1> to vector<2x1xi1>
    %370 = vector.broadcast %369 : vector<2x1xi1> to vector<2x32xi1>
    %371 = vector.broadcast %cst_88 : f32 to vector<2x32xf32>
    %372 = arith.select %370, %337, %371 : vector<2x32xi1>, vector<2x32xf32>
    %373 = arith.index_cast %c3_i32 : i32 to index
    %c0_89 = arith.constant 0 : index
    %c0_90 = arith.constant 0 : index
    %374 = vector.load %arg6[%373, %c0_89, %c0_90] : memref<8x2x32xf32, #tpu.memory_space<vmem>>, vector<1x2x32xf32>
    %375 = vector.shape_cast %374 : vector<1x2x32xf32> to vector<2x32xf32>
    %376 = vector.shape_cast %372 : vector<2x32xf32> to vector<1x2x32xf32>
    tpu.vector_store %arg6[%373, %c0_89, %c0_90], %376 {strides = array<i32>} : memref<8x2x32xf32, #tpu.memory_space<vmem>>, vector<1x2x32xf32>,
    %cst_91 = arith.constant 0.000000e+00 : f32
    %377 = vector.shape_cast %368 : vector<2x1xi1> to vector<2x1xi1>
    %378 = vector.broadcast %377 : vector<2x1xi1> to vector<2x32xi1>
    %379 = vector.broadcast %cst_91 : f32 to vector<2x32xf32>
    %380 = arith.select %378, %362, %379 : vector<2x32xi1>, vector<2x32xf32>
    %381 = arith.index_cast %302 : i32 to index
    %c0_92 = arith.constant 0 : index
    %c0_93 = arith.constant 0 : index
    %382 = vector.load %arg7[%381, %c0_92, %c0_93] : memref<8x2x32xf32, #tpu.memory_space<vmem>>, vector<1x2x32xf32>
    %383 = vector.shape_cast %382 : vector<1x2x32xf32> to vector<2x32xf32>
    %384 = vector.shape_cast %380 : vector<2x32xf32> to vector<1x2x32xf32>
    tpu.vector_store %arg7[%381, %c0_92, %c0_93], %384 {strides = array<i32>} : memref<8x2x32xf32, #tpu.memory_space<vmem>>, vector<1x2x32xf32>,
    %385 = vector.shape_cast %365 : vector<2x1xi1> to vector<2x1xi1>
    %386 = vector.broadcast %385 : vector<2x1xi1> to vector<2x32xi1>
    %387 = arith.select %386, %337, %292 : vector<2x32xi1>, vector<2x32xf32>
    %388 = vector.shape_cast %365 : vector<2x1xi1> to vector<2x1xi1>
    %389 = vector.broadcast %388 : vector<2x1xi1> to vector<2x32xi1>
    %390 = arith.select %389, %335, %295 : vector<2x32xi1>, vector<2x32xf32>
    %391 = vector.shape_cast %368 : vector<2x1xi1> to vector<2x1xi1>
    %392 = vector.broadcast %391 : vector<2x1xi1> to vector<2x32xi1>
    %393 = arith.select %392, %362, %298 : vector<2x32xi1>, vector<2x32xf32>
    %394 = vector.shape_cast %368 : vector<2x1xi1> to vector<2x1xi1>
    %395 = vector.broadcast %394 : vector<2x1xi1> to vector<2x32xi1>
    %396 = arith.select %395, %360, %301 : vector<2x32xi1>, vector<2x32xf32>
    %c4_i32 = arith.constant 4 : i32
    %c7_i32_94 = arith.constant 7 : i32
    %397 = arith.subi %c7_i32_94, %c4_i32 : i32
    %398 = arith.index_cast %c4_i32 : i32 to index
    %c0_95 = arith.constant 0 : index
    %c0_96 = arith.constant 0 : index
    %399 = vector.load %arg1[%398, %c0_95, %c0_96] : memref<8x2x128xf32, #tpu.memory_space<vmem>>, vector<1x2x128xf32>
    %400 = vector.shape_cast %399 : vector<1x2x128xf32> to vector<2x128xf32>
    %cst_97 = arith.constant dense<0.000000e+00> : vector<2x128xf32>
    %401 = tpu.matmul %387, %3, %cst_97 {dimension_numbers = #tpu.dot_dimension_numbers<[1], [0], [0], [1], [0, 0, 1, 1], [], []>} : vector<2x32xf32>, vector<32x128xf32>, vector<2x128xf32> -> vector<2x128xf32>
    %402 = arith.addf %400, %401 : vector<2x128xf32>
    %403 = arith.index_cast %397 : i32 to index
    %c0_98 = arith.constant 0 : index
    %c0_99 = arith.constant 0 : index
    %404 = vector.load %arg2[%403, %c0_98, %c0_99] : memref<8x2x128xf32, #tpu.memory_space<vmem>>, vector<1x2x128xf32>
    %405 = vector.shape_cast %404 : vector<1x2x128xf32> to vector<2x128xf32>
    %cst_100 = arith.constant dense<0.000000e+00> : vector<2x128xf32>
    %406 = tpu.matmul %393, %4, %cst_100 {dimension_numbers = #tpu.dot_dimension_numbers<[1], [0], [0], [1], [0, 0, 1, 1], [], []>} : vector<2x32xf32>, vector<32x128xf32>, vector<2x128xf32> -> vector<2x128xf32>
    %407 = arith.addf %405, %406 : vector<2x128xf32>
    %408 = vector.extract_strided_slice %402 {offsets = [0, 0], sizes = [2, 32], strides = [1, 1]} : vector<2x128xf32> to vector<2x32xf32>
    %409 = arith.negf %408 : vector<2x32xf32>
    %410 = math.exp %409 : vector<2x32xf32>
    %cst_101 = arith.constant 1.000000e+00 : f32
    %411 = vector.broadcast %cst_101 : f32 to vector<2x32xf32>
    %412 = arith.addf %411, %410 : vector<2x32xf32>
    %413 = arith.divf %411, %412 : vector<2x32xf32>
    %414 = vector.extract_strided_slice %402 {offsets = [0, 32], sizes = [2, 32], strides = [1, 1]} : vector<2x128xf32> to vector<2x32xf32>
    %415 = arith.negf %414 : vector<2x32xf32>
    %416 = math.exp %415 : vector<2x32xf32>
    %cst_102 = arith.constant 1.000000e+00 : f32
    %417 = vector.broadcast %cst_102 : f32 to vector<2x32xf32>
    %418 = arith.addf %417, %416 : vector<2x32xf32>
    %419 = arith.divf %417, %418 : vector<2x32xf32>
    %420 = vector.extract_strided_slice %402 {offsets = [0, 64], sizes = [2, 32], strides = [1, 1]} : vector<2x128xf32> to vector<2x32xf32>
    %421 = math.tanh %420 : vector<2x32xf32>
    %422 = vector.extract_strided_slice %402 {offsets = [0, 96], sizes = [2, 32], strides = [1, 1]} : vector<2x128xf32> to vector<2x32xf32>
    %423 = arith.negf %422 : vector<2x32xf32>
    %424 = math.exp %423 : vector<2x32xf32>
    %cst_103 = arith.constant 1.000000e+00 : f32
    %425 = vector.broadcast %cst_103 : f32 to vector<2x32xf32>
    %426 = arith.addf %425, %424 : vector<2x32xf32>
    %427 = arith.divf %425, %426 : vector<2x32xf32>
    %428 = arith.mulf %419, %390 : vector<2x32xf32>
    %429 = arith.mulf %413, %421 : vector<2x32xf32>
    %430 = arith.addf %428, %429 : vector<2x32xf32>
    %431 = math.tanh %430 : vector<2x32xf32>
    %432 = arith.mulf %427, %431 : vector<2x32xf32>
    %433 = vector.extract_strided_slice %407 {offsets = [0, 0], sizes = [2, 32], strides = [1, 1]} : vector<2x128xf32> to vector<2x32xf32>
    %434 = arith.negf %433 : vector<2x32xf32>
    %435 = math.exp %434 : vector<2x32xf32>
    %cst_104 = arith.constant 1.000000e+00 : f32
    %436 = vector.broadcast %cst_104 : f32 to vector<2x32xf32>
    %437 = arith.addf %436, %435 : vector<2x32xf32>
    %438 = arith.divf %436, %437 : vector<2x32xf32>
    %439 = vector.extract_strided_slice %407 {offsets = [0, 32], sizes = [2, 32], strides = [1, 1]} : vector<2x128xf32> to vector<2x32xf32>
    %440 = arith.negf %439 : vector<2x32xf32>
    %441 = math.exp %440 : vector<2x32xf32>
    %cst_105 = arith.constant 1.000000e+00 : f32
    %442 = vector.broadcast %cst_105 : f32 to vector<2x32xf32>
    %443 = arith.addf %442, %441 : vector<2x32xf32>
    %444 = arith.divf %442, %443 : vector<2x32xf32>
    %445 = vector.extract_strided_slice %407 {offsets = [0, 64], sizes = [2, 32], strides = [1, 1]} : vector<2x128xf32> to vector<2x32xf32>
    %446 = math.tanh %445 : vector<2x32xf32>
    %447 = vector.extract_strided_slice %407 {offsets = [0, 96], sizes = [2, 32], strides = [1, 1]} : vector<2x128xf32> to vector<2x32xf32>
    %448 = arith.negf %447 : vector<2x32xf32>
    %449 = math.exp %448 : vector<2x32xf32>
    %cst_106 = arith.constant 1.000000e+00 : f32
    %450 = vector.broadcast %cst_106 : f32 to vector<2x32xf32>
    %451 = arith.addf %450, %449 : vector<2x32xf32>
    %452 = arith.divf %450, %451 : vector<2x32xf32>
    %453 = arith.mulf %444, %396 : vector<2x32xf32>
    %454 = arith.mulf %438, %446 : vector<2x32xf32>
    %455 = arith.addf %453, %454 : vector<2x32xf32>
    %456 = math.tanh %455 : vector<2x32xf32>
    %457 = arith.mulf %452, %456 : vector<2x32xf32>
    %458 = arith.addi %6, %c4_i32 : i32
    %459 = vector.broadcast %458 : i32 to vector<2x1xi32>
    %460 = arith.cmpi slt, %459, %5 : vector<2x1xi32>
    %461 = arith.addi %8, %397 : i32
    %462 = vector.broadcast %461 : i32 to vector<2x1xi32>
    %463 = arith.cmpi slt, %462, %5 : vector<2x1xi32>
    %cst_107 = arith.constant 0.000000e+00 : f32
    %464 = vector.shape_cast %460 : vector<2x1xi1> to vector<2x1xi1>
    %465 = vector.broadcast %464 : vector<2x1xi1> to vector<2x32xi1>
    %466 = vector.broadcast %cst_107 : f32 to vector<2x32xf32>
    %467 = arith.select %465, %432, %466 : vector<2x32xi1>, vector<2x32xf32>
    %468 = arith.index_cast %c4_i32 : i32 to index
    %c0_108 = arith.constant 0 : index
    %c0_109 = arith.constant 0 : index
    %469 = vector.load %arg6[%468, %c0_108, %c0_109] : memref<8x2x32xf32, #tpu.memory_space<vmem>>, vector<1x2x32xf32>
    %470 = vector.shape_cast %469 : vector<1x2x32xf32> to vector<2x32xf32>
    %471 = vector.shape_cast %467 : vector<2x32xf32> to vector<1x2x32xf32>
    tpu.vector_store %arg6[%468, %c0_108, %c0_109], %471 {strides = array<i32>} : memref<8x2x32xf32, #tpu.memory_space<vmem>>, vector<1x2x32xf32>,
    %cst_110 = arith.constant 0.000000e+00 : f32
    %472 = vector.shape_cast %463 : vector<2x1xi1> to vector<2x1xi1>
    %473 = vector.broadcast %472 : vector<2x1xi1> to vector<2x32xi1>
    %474 = vector.broadcast %cst_110 : f32 to vector<2x32xf32>
    %475 = arith.select %473, %457, %474 : vector<2x32xi1>, vector<2x32xf32>
    %476 = arith.index_cast %397 : i32 to index
    %c0_111 = arith.constant 0 : index
    %c0_112 = arith.constant 0 : index
    %477 = vector.load %arg7[%476, %c0_111, %c0_112] : memref<8x2x32xf32, #tpu.memory_space<vmem>>, vector<1x2x32xf32>
    %478 = vector.shape_cast %477 : vector<1x2x32xf32> to vector<2x32xf32>
    %479 = vector.shape_cast %475 : vector<2x32xf32> to vector<1x2x32xf32>
    tpu.vector_store %arg7[%476, %c0_111, %c0_112], %479 {strides = array<i32>} : memref<8x2x32xf32, #tpu.memory_space<vmem>>, vector<1x2x32xf32>,
    %480 = vector.shape_cast %460 : vector<2x1xi1> to vector<2x1xi1>
    %481 = vector.broadcast %480 : vector<2x1xi1> to vector<2x32xi1>
    %482 = arith.select %481, %432, %387 : vector<2x32xi1>, vector<2x32xf32>
    %483 = vector.shape_cast %460 : vector<2x1xi1> to vector<2x1xi1>
    %484 = vector.broadcast %483 : vector<2x1xi1> to vector<2x32xi1>
    %485 = arith.select %484, %430, %390 : vector<2x32xi1>, vector<2x32xf32>
    %486 = vector.shape_cast %463 : vector<2x1xi1> to vector<2x1xi1>
    %487 = vector.broadcast %486 : vector<2x1xi1> to vector<2x32xi1>
    %488 = arith.select %487, %457, %393 : vector<2x32xi1>, vector<2x32xf32>
    %489 = vector.shape_cast %463 : vector<2x1xi1> to vector<2x1xi1>
    %490 = vector.broadcast %489 : vector<2x1xi1> to vector<2x32xi1>
    %491 = arith.select %490, %455, %396 : vector<2x32xi1>, vector<2x32xf32>
    %c5_i32 = arith.constant 5 : i32
    %c7_i32_113 = arith.constant 7 : i32
    %492 = arith.subi %c7_i32_113, %c5_i32 : i32
    %493 = arith.index_cast %c5_i32 : i32 to index
    %c0_114 = arith.constant 0 : index
    %c0_115 = arith.constant 0 : index
    %494 = vector.load %arg1[%493, %c0_114, %c0_115] : memref<8x2x128xf32, #tpu.memory_space<vmem>>, vector<1x2x128xf32>
    %495 = vector.shape_cast %494 : vector<1x2x128xf32> to vector<2x128xf32>
    %cst_116 = arith.constant dense<0.000000e+00> : vector<2x128xf32>
    %496 = tpu.matmul %482, %3, %cst_116 {dimension_numbers = #tpu.dot_dimension_numbers<[1], [0], [0], [1], [0, 0, 1, 1], [], []>} : vector<2x32xf32>, vector<32x128xf32>, vector<2x128xf32> -> vector<2x128xf32>
    %497 = arith.addf %495, %496 : vector<2x128xf32>
    %498 = arith.index_cast %492 : i32 to index
    %c0_117 = arith.constant 0 : index
    %c0_118 = arith.constant 0 : index
    %499 = vector.load %arg2[%498, %c0_117, %c0_118] : memref<8x2x128xf32, #tpu.memory_space<vmem>>, vector<1x2x128xf32>
    %500 = vector.shape_cast %499 : vector<1x2x128xf32> to vector<2x128xf32>
    %cst_119 = arith.constant dense<0.000000e+00> : vector<2x128xf32>
    %501 = tpu.matmul %488, %4, %cst_119 {dimension_numbers = #tpu.dot_dimension_numbers<[1], [0], [0], [1], [0, 0, 1, 1], [], []>} : vector<2x32xf32>, vector<32x128xf32>, vector<2x128xf32> -> vector<2x128xf32>
    %502 = arith.addf %500, %501 : vector<2x128xf32>
    %503 = vector.extract_strided_slice %497 {offsets = [0, 0], sizes = [2, 32], strides = [1, 1]} : vector<2x128xf32> to vector<2x32xf32>
    %504 = arith.negf %503 : vector<2x32xf32>
    %505 = math.exp %504 : vector<2x32xf32>
    %cst_120 = arith.constant 1.000000e+00 : f32
    %506 = vector.broadcast %cst_120 : f32 to vector<2x32xf32>
    %507 = arith.addf %506, %505 : vector<2x32xf32>
    %508 = arith.divf %506, %507 : vector<2x32xf32>
    %509 = vector.extract_strided_slice %497 {offsets = [0, 32], sizes = [2, 32], strides = [1, 1]} : vector<2x128xf32> to vector<2x32xf32>
    %510 = arith.negf %509 : vector<2x32xf32>
    %511 = math.exp %510 : vector<2x32xf32>
    %cst_121 = arith.constant 1.000000e+00 : f32
    %512 = vector.broadcast %cst_121 : f32 to vector<2x32xf32>
    %513 = arith.addf %512, %511 : vector<2x32xf32>
    %514 = arith.divf %512, %513 : vector<2x32xf32>
    %515 = vector.extract_strided_slice %497 {offsets = [0, 64], sizes = [2, 32], strides = [1, 1]} : vector<2x128xf32> to vector<2x32xf32>
    %516 = math.tanh %515 : vector<2x32xf32>
    %517 = vector.extract_strided_slice %497 {offsets = [0, 96], sizes = [2, 32], strides = [1, 1]} : vector<2x128xf32> to vector<2x32xf32>
    %518 = arith.negf %517 : vector<2x32xf32>
    %519 = math.exp %518 : vector<2x32xf32>
    %cst_122 = arith.constant 1.000000e+00 : f32
    %520 = vector.broadcast %cst_122 : f32 to vector<2x32xf32>
    %521 = arith.addf %520, %519 : vector<2x32xf32>
    %522 = arith.divf %520, %521 : vector<2x32xf32>
    %523 = arith.mulf %514, %485 : vector<2x32xf32>
    %524 = arith.mulf %508, %516 : vector<2x32xf32>
    %525 = arith.addf %523, %524 : vector<2x32xf32>
    %526 = math.tanh %525 : vector<2x32xf32>
    %527 = arith.mulf %522, %526 : vector<2x32xf32>
    %528 = vector.extract_strided_slice %502 {offsets = [0, 0], sizes = [2, 32], strides = [1, 1]} : vector<2x128xf32> to vector<2x32xf32>
    %529 = arith.negf %528 : vector<2x32xf32>
    %530 = math.exp %529 : vector<2x32xf32>
    %cst_123 = arith.constant 1.000000e+00 : f32
    %531 = vector.broadcast %cst_123 : f32 to vector<2x32xf32>
    %532 = arith.addf %531, %530 : vector<2x32xf32>
    %533 = arith.divf %531, %532 : vector<2x32xf32>
    %534 = vector.extract_strided_slice %502 {offsets = [0, 32], sizes = [2, 32], strides = [1, 1]} : vector<2x128xf32> to vector<2x32xf32>
    %535 = arith.negf %534 : vector<2x32xf32>
    %536 = math.exp %535 : vector<2x32xf32>
    %cst_124 = arith.constant 1.000000e+00 : f32
    %537 = vector.broadcast %cst_124 : f32 to vector<2x32xf32>
    %538 = arith.addf %537, %536 : vector<2x32xf32>
    %539 = arith.divf %537, %538 : vector<2x32xf32>
    %540 = vector.extract_strided_slice %502 {offsets = [0, 64], sizes = [2, 32], strides = [1, 1]} : vector<2x128xf32> to vector<2x32xf32>
    %541 = math.tanh %540 : vector<2x32xf32>
    %542 = vector.extract_strided_slice %502 {offsets = [0, 96], sizes = [2, 32], strides = [1, 1]} : vector<2x128xf32> to vector<2x32xf32>
    %543 = arith.negf %542 : vector<2x32xf32>
    %544 = math.exp %543 : vector<2x32xf32>
    %cst_125 = arith.constant 1.000000e+00 : f32
    %545 = vector.broadcast %cst_125 : f32 to vector<2x32xf32>
    %546 = arith.addf %545, %544 : vector<2x32xf32>
    %547 = arith.divf %545, %546 : vector<2x32xf32>
    %548 = arith.mulf %539, %491 : vector<2x32xf32>
    %549 = arith.mulf %533, %541 : vector<2x32xf32>
    %550 = arith.addf %548, %549 : vector<2x32xf32>
    %551 = math.tanh %550 : vector<2x32xf32>
    %552 = arith.mulf %547, %551 : vector<2x32xf32>
    %553 = arith.addi %6, %c5_i32 : i32
    %554 = vector.broadcast %553 : i32 to vector<2x1xi32>
    %555 = arith.cmpi slt, %554, %5 : vector<2x1xi32>
    %556 = arith.addi %8, %492 : i32
    %557 = vector.broadcast %556 : i32 to vector<2x1xi32>
    %558 = arith.cmpi slt, %557, %5 : vector<2x1xi32>
    %cst_126 = arith.constant 0.000000e+00 : f32
    %559 = vector.shape_cast %555 : vector<2x1xi1> to vector<2x1xi1>
    %560 = vector.broadcast %559 : vector<2x1xi1> to vector<2x32xi1>
    %561 = vector.broadcast %cst_126 : f32 to vector<2x32xf32>
    %562 = arith.select %560, %527, %561 : vector<2x32xi1>, vector<2x32xf32>
    %563 = arith.index_cast %c5_i32 : i32 to index
    %c0_127 = arith.constant 0 : index
    %c0_128 = arith.constant 0 : index
    %564 = vector.load %arg6[%563, %c0_127, %c0_128] : memref<8x2x32xf32, #tpu.memory_space<vmem>>, vector<1x2x32xf32>
    %565 = vector.shape_cast %564 : vector<1x2x32xf32> to vector<2x32xf32>
    %566 = vector.shape_cast %562 : vector<2x32xf32> to vector<1x2x32xf32>
    tpu.vector_store %arg6[%563, %c0_127, %c0_128], %566 {strides = array<i32>} : memref<8x2x32xf32, #tpu.memory_space<vmem>>, vector<1x2x32xf32>,
    %cst_129 = arith.constant 0.000000e+00 : f32
    %567 = vector.shape_cast %558 : vector<2x1xi1> to vector<2x1xi1>
    %568 = vector.broadcast %567 : vector<2x1xi1> to vector<2x32xi1>
    %569 = vector.broadcast %cst_129 : f32 to vector<2x32xf32>
    %570 = arith.select %568, %552, %569 : vector<2x32xi1>, vector<2x32xf32>
    %571 = arith.index_cast %492 : i32 to index
    %c0_130 = arith.constant 0 : index
    %c0_131 = arith.constant 0 : index
    %572 = vector.load %arg7[%571, %c0_130, %c0_131] : memref<8x2x32xf32, #tpu.memory_space<vmem>>, vector<1x2x32xf32>
    %573 = vector.shape_cast %572 : vector<1x2x32xf32> to vector<2x32xf32>
    %574 = vector.shape_cast %570 : vector<2x32xf32> to vector<1x2x32xf32>
    tpu.vector_store %arg7[%571, %c0_130, %c0_131], %574 {strides = array<i32>} : memref<8x2x32xf32, #tpu.memory_space<vmem>>, vector<1x2x32xf32>,
    %575 = vector.shape_cast %555 : vector<2x1xi1> to vector<2x1xi1>
    %576 = vector.broadcast %575 : vector<2x1xi1> to vector<2x32xi1>
    %577 = arith.select %576, %527, %482 : vector<2x32xi1>, vector<2x32xf32>
    %578 = vector.shape_cast %555 : vector<2x1xi1> to vector<2x1xi1>
    %579 = vector.broadcast %578 : vector<2x1xi1> to vector<2x32xi1>
    %580 = arith.select %579, %525, %485 : vector<2x32xi1>, vector<2x32xf32>
    %581 = vector.shape_cast %558 : vector<2x1xi1> to vector<2x1xi1>
    %582 = vector.broadcast %581 : vector<2x1xi1> to vector<2x32xi1>
    %583 = arith.select %582, %552, %488 : vector<2x32xi1>, vector<2x32xf32>
    %584 = vector.shape_cast %558 : vector<2x1xi1> to vector<2x1xi1>
    %585 = vector.broadcast %584 : vector<2x1xi1> to vector<2x32xi1>
    %586 = arith.select %585, %550, %491 : vector<2x32xi1>, vector<2x32xf32>
    %c6_i32 = arith.constant 6 : i32
    %c7_i32_132 = arith.constant 7 : i32
    %587 = arith.subi %c7_i32_132, %c6_i32 : i32
    %588 = arith.index_cast %c6_i32 : i32 to index
    %c0_133 = arith.constant 0 : index
    %c0_134 = arith.constant 0 : index
    %589 = vector.load %arg1[%588, %c0_133, %c0_134] : memref<8x2x128xf32, #tpu.memory_space<vmem>>, vector<1x2x128xf32>
    %590 = vector.shape_cast %589 : vector<1x2x128xf32> to vector<2x128xf32>
    %cst_135 = arith.constant dense<0.000000e+00> : vector<2x128xf32>
    %591 = tpu.matmul %577, %3, %cst_135 {dimension_numbers = #tpu.dot_dimension_numbers<[1], [0], [0], [1], [0, 0, 1, 1], [], []>} : vector<2x32xf32>, vector<32x128xf32>, vector<2x128xf32> -> vector<2x128xf32>
    %592 = arith.addf %590, %591 : vector<2x128xf32>
    %593 = arith.index_cast %587 : i32 to index
    %c0_136 = arith.constant 0 : index
    %c0_137 = arith.constant 0 : index
    %594 = vector.load %arg2[%593, %c0_136, %c0_137] : memref<8x2x128xf32, #tpu.memory_space<vmem>>, vector<1x2x128xf32>
    %595 = vector.shape_cast %594 : vector<1x2x128xf32> to vector<2x128xf32>
    %cst_138 = arith.constant dense<0.000000e+00> : vector<2x128xf32>
    %596 = tpu.matmul %583, %4, %cst_138 {dimension_numbers = #tpu.dot_dimension_numbers<[1], [0], [0], [1], [0, 0, 1, 1], [], []>} : vector<2x32xf32>, vector<32x128xf32>, vector<2x128xf32> -> vector<2x128xf32>
    %597 = arith.addf %595, %596 : vector<2x128xf32>
    %598 = vector.extract_strided_slice %592 {offsets = [0, 0], sizes = [2, 32], strides = [1, 1]} : vector<2x128xf32> to vector<2x32xf32>
    %599 = arith.negf %598 : vector<2x32xf32>
    %600 = math.exp %599 : vector<2x32xf32>
    %cst_139 = arith.constant 1.000000e+00 : f32
    %601 = vector.broadcast %cst_139 : f32 to vector<2x32xf32>
    %602 = arith.addf %601, %600 : vector<2x32xf32>
    %603 = arith.divf %601, %602 : vector<2x32xf32>
    %604 = vector.extract_strided_slice %592 {offsets = [0, 32], sizes = [2, 32], strides = [1, 1]} : vector<2x128xf32> to vector<2x32xf32>
    %605 = arith.negf %604 : vector<2x32xf32>
    %606 = math.exp %605 : vector<2x32xf32>
    %cst_140 = arith.constant 1.000000e+00 : f32
    %607 = vector.broadcast %cst_140 : f32 to vector<2x32xf32>
    %608 = arith.addf %607, %606 : vector<2x32xf32>
    %609 = arith.divf %607, %608 : vector<2x32xf32>
    %610 = vector.extract_strided_slice %592 {offsets = [0, 64], sizes = [2, 32], strides = [1, 1]} : vector<2x128xf32> to vector<2x32xf32>
    %611 = math.tanh %610 : vector<2x32xf32>
    %612 = vector.extract_strided_slice %592 {offsets = [0, 96], sizes = [2, 32], strides = [1, 1]} : vector<2x128xf32> to vector<2x32xf32>
    %613 = arith.negf %612 : vector<2x32xf32>
    %614 = math.exp %613 : vector<2x32xf32>
    %cst_141 = arith.constant 1.000000e+00 : f32
    %615 = vector.broadcast %cst_141 : f32 to vector<2x32xf32>
    %616 = arith.addf %615, %614 : vector<2x32xf32>
    %617 = arith.divf %615, %616 : vector<2x32xf32>
    %618 = arith.mulf %609, %580 : vector<2x32xf32>
    %619 = arith.mulf %603, %611 : vector<2x32xf32>
    %620 = arith.addf %618, %619 : vector<2x32xf32>
    %621 = math.tanh %620 : vector<2x32xf32>
    %622 = arith.mulf %617, %621 : vector<2x32xf32>
    %623 = vector.extract_strided_slice %597 {offsets = [0, 0], sizes = [2, 32], strides = [1, 1]} : vector<2x128xf32> to vector<2x32xf32>
    %624 = arith.negf %623 : vector<2x32xf32>
    %625 = math.exp %624 : vector<2x32xf32>
    %cst_142 = arith.constant 1.000000e+00 : f32
    %626 = vector.broadcast %cst_142 : f32 to vector<2x32xf32>
    %627 = arith.addf %626, %625 : vector<2x32xf32>
    %628 = arith.divf %626, %627 : vector<2x32xf32>
    %629 = vector.extract_strided_slice %597 {offsets = [0, 32], sizes = [2, 32], strides = [1, 1]} : vector<2x128xf32> to vector<2x32xf32>
    %630 = arith.negf %629 : vector<2x32xf32>
    %631 = math.exp %630 : vector<2x32xf32>
    %cst_143 = arith.constant 1.000000e+00 : f32
    %632 = vector.broadcast %cst_143 : f32 to vector<2x32xf32>
    %633 = arith.addf %632, %631 : vector<2x32xf32>
    %634 = arith.divf %632, %633 : vector<2x32xf32>
    %635 = vector.extract_strided_slice %597 {offsets = [0, 64], sizes = [2, 32], strides = [1, 1]} : vector<2x128xf32> to vector<2x32xf32>
    %636 = math.tanh %635 : vector<2x32xf32>
    %637 = vector.extract_strided_slice %597 {offsets = [0, 96], sizes = [2, 32], strides = [1, 1]} : vector<2x128xf32> to vector<2x32xf32>
    %638 = arith.negf %637 : vector<2x32xf32>
    %639 = math.exp %638 : vector<2x32xf32>
    %cst_144 = arith.constant 1.000000e+00 : f32
    %640 = vector.broadcast %cst_144 : f32 to vector<2x32xf32>
    %641 = arith.addf %640, %639 : vector<2x32xf32>
    %642 = arith.divf %640, %641 : vector<2x32xf32>
    %643 = arith.mulf %634, %586 : vector<2x32xf32>
    %644 = arith.mulf %628, %636 : vector<2x32xf32>
    %645 = arith.addf %643, %644 : vector<2x32xf32>
    %646 = math.tanh %645 : vector<2x32xf32>
    %647 = arith.mulf %642, %646 : vector<2x32xf32>
    %648 = arith.addi %6, %c6_i32 : i32
    %649 = vector.broadcast %648 : i32 to vector<2x1xi32>
    %650 = arith.cmpi slt, %649, %5 : vector<2x1xi32>
    %651 = arith.addi %8, %587 : i32
    %652 = vector.broadcast %651 : i32 to vector<2x1xi32>
    %653 = arith.cmpi slt, %652, %5 : vector<2x1xi32>
    %cst_145 = arith.constant 0.000000e+00 : f32
    %654 = vector.shape_cast %650 : vector<2x1xi1> to vector<2x1xi1>
    %655 = vector.broadcast %654 : vector<2x1xi1> to vector<2x32xi1>
    %656 = vector.broadcast %cst_145 : f32 to vector<2x32xf32>
    %657 = arith.select %655, %622, %656 : vector<2x32xi1>, vector<2x32xf32>
    %658 = arith.index_cast %c6_i32 : i32 to index
    %c0_146 = arith.constant 0 : index
    %c0_147 = arith.constant 0 : index
    %659 = vector.load %arg6[%658, %c0_146, %c0_147] : memref<8x2x32xf32, #tpu.memory_space<vmem>>, vector<1x2x32xf32>
    %660 = vector.shape_cast %659 : vector<1x2x32xf32> to vector<2x32xf32>
    %661 = vector.shape_cast %657 : vector<2x32xf32> to vector<1x2x32xf32>
    tpu.vector_store %arg6[%658, %c0_146, %c0_147], %661 {strides = array<i32>} : memref<8x2x32xf32, #tpu.memory_space<vmem>>, vector<1x2x32xf32>,
    %cst_148 = arith.constant 0.000000e+00 : f32
    %662 = vector.shape_cast %653 : vector<2x1xi1> to vector<2x1xi1>
    %663 = vector.broadcast %662 : vector<2x1xi1> to vector<2x32xi1>
    %664 = vector.broadcast %cst_148 : f32 to vector<2x32xf32>
    %665 = arith.select %663, %647, %664 : vector<2x32xi1>, vector<2x32xf32>
    %666 = arith.index_cast %587 : i32 to index
    %c0_149 = arith.constant 0 : index
    %c0_150 = arith.constant 0 : index
    %667 = vector.load %arg7[%666, %c0_149, %c0_150] : memref<8x2x32xf32, #tpu.memory_space<vmem>>, vector<1x2x32xf32>
    %668 = vector.shape_cast %667 : vector<1x2x32xf32> to vector<2x32xf32>
    %669 = vector.shape_cast %665 : vector<2x32xf32> to vector<1x2x32xf32>
    tpu.vector_store %arg7[%666, %c0_149, %c0_150], %669 {strides = array<i32>} : memref<8x2x32xf32, #tpu.memory_space<vmem>>, vector<1x2x32xf32>,
    %670 = vector.shape_cast %650 : vector<2x1xi1> to vector<2x1xi1>
    %671 = vector.broadcast %670 : vector<2x1xi1> to vector<2x32xi1>
    %672 = arith.select %671, %622, %577 : vector<2x32xi1>, vector<2x32xf32>
    %673 = vector.shape_cast %650 : vector<2x1xi1> to vector<2x1xi1>
    %674 = vector.broadcast %673 : vector<2x1xi1> to vector<2x32xi1>
    %675 = arith.select %674, %620, %580 : vector<2x32xi1>, vector<2x32xf32>
    %676 = vector.shape_cast %653 : vector<2x1xi1> to vector<2x1xi1>
    %677 = vector.broadcast %676 : vector<2x1xi1> to vector<2x32xi1>
    %678 = arith.select %677, %647, %583 : vector<2x32xi1>, vector<2x32xf32>
    %679 = vector.shape_cast %653 : vector<2x1xi1> to vector<2x1xi1>
    %680 = vector.broadcast %679 : vector<2x1xi1> to vector<2x32xi1>
    %681 = arith.select %680, %645, %586 : vector<2x32xi1>, vector<2x32xf32>
    %c7_i32_151 = arith.constant 7 : i32
    %c7_i32_152 = arith.constant 7 : i32
    %682 = arith.subi %c7_i32_152, %c7_i32_151 : i32
    %683 = arith.index_cast %c7_i32_151 : i32 to index
    %c0_153 = arith.constant 0 : index
    %c0_154 = arith.constant 0 : index
    %684 = vector.load %arg1[%683, %c0_153, %c0_154] : memref<8x2x128xf32, #tpu.memory_space<vmem>>, vector<1x2x128xf32>
    %685 = vector.shape_cast %684 : vector<1x2x128xf32> to vector<2x128xf32>
    %cst_155 = arith.constant dense<0.000000e+00> : vector<2x128xf32>
    %686 = tpu.matmul %672, %3, %cst_155 {dimension_numbers = #tpu.dot_dimension_numbers<[1], [0], [0], [1], [0, 0, 1, 1], [], []>} : vector<2x32xf32>, vector<32x128xf32>, vector<2x128xf32> -> vector<2x128xf32>
    %687 = arith.addf %685, %686 : vector<2x128xf32>
    %688 = arith.index_cast %682 : i32 to index
    %c0_156 = arith.constant 0 : index
    %c0_157 = arith.constant 0 : index
    %689 = vector.load %arg2[%688, %c0_156, %c0_157] : memref<8x2x128xf32, #tpu.memory_space<vmem>>, vector<1x2x128xf32>
    %690 = vector.shape_cast %689 : vector<1x2x128xf32> to vector<2x128xf32>
    %cst_158 = arith.constant dense<0.000000e+00> : vector<2x128xf32>
    %691 = tpu.matmul %678, %4, %cst_158 {dimension_numbers = #tpu.dot_dimension_numbers<[1], [0], [0], [1], [0, 0, 1, 1], [], []>} : vector<2x32xf32>, vector<32x128xf32>, vector<2x128xf32> -> vector<2x128xf32>
    %692 = arith.addf %690, %691 : vector<2x128xf32>
    %693 = vector.extract_strided_slice %687 {offsets = [0, 0], sizes = [2, 32], strides = [1, 1]} : vector<2x128xf32> to vector<2x32xf32>
    %694 = arith.negf %693 : vector<2x32xf32>
    %695 = math.exp %694 : vector<2x32xf32>
    %cst_159 = arith.constant 1.000000e+00 : f32
    %696 = vector.broadcast %cst_159 : f32 to vector<2x32xf32>
    %697 = arith.addf %696, %695 : vector<2x32xf32>
    %698 = arith.divf %696, %697 : vector<2x32xf32>
    %699 = vector.extract_strided_slice %687 {offsets = [0, 32], sizes = [2, 32], strides = [1, 1]} : vector<2x128xf32> to vector<2x32xf32>
    %700 = arith.negf %699 : vector<2x32xf32>
    %701 = math.exp %700 : vector<2x32xf32>
    %cst_160 = arith.constant 1.000000e+00 : f32
    %702 = vector.broadcast %cst_160 : f32 to vector<2x32xf32>
    %703 = arith.addf %702, %701 : vector<2x32xf32>
    %704 = arith.divf %702, %703 : vector<2x32xf32>
    %705 = vector.extract_strided_slice %687 {offsets = [0, 64], sizes = [2, 32], strides = [1, 1]} : vector<2x128xf32> to vector<2x32xf32>
    %706 = math.tanh %705 : vector<2x32xf32>
    %707 = vector.extract_strided_slice %687 {offsets = [0, 96], sizes = [2, 32], strides = [1, 1]} : vector<2x128xf32> to vector<2x32xf32>
    %708 = arith.negf %707 : vector<2x32xf32>
    %709 = math.exp %708 : vector<2x32xf32>
    %cst_161 = arith.constant 1.000000e+00 : f32
    %710 = vector.broadcast %cst_161 : f32 to vector<2x32xf32>
    %711 = arith.addf %710, %709 : vector<2x32xf32>
    %712 = arith.divf %710, %711 : vector<2x32xf32>
    %713 = arith.mulf %704, %675 : vector<2x32xf32>
    %714 = arith.mulf %698, %706 : vector<2x32xf32>
    %715 = arith.addf %713, %714 : vector<2x32xf32>
    %716 = math.tanh %715 : vector<2x32xf32>
    %717 = arith.mulf %712, %716 : vector<2x32xf32>
    %718 = vector.extract_strided_slice %692 {offsets = [0, 0], sizes = [2, 32], strides = [1, 1]} : vector<2x128xf32> to vector<2x32xf32>
    %719 = arith.negf %718 : vector<2x32xf32>
    %720 = math.exp %719 : vector<2x32xf32>
    %cst_162 = arith.constant 1.000000e+00 : f32
    %721 = vector.broadcast %cst_162 : f32 to vector<2x32xf32>
    %722 = arith.addf %721, %720 : vector<2x32xf32>
    %723 = arith.divf %721, %722 : vector<2x32xf32>
    %724 = vector.extract_strided_slice %692 {offsets = [0, 32], sizes = [2, 32], strides = [1, 1]} : vector<2x128xf32> to vector<2x32xf32>
    %725 = arith.negf %724 : vector<2x32xf32>
    %726 = math.exp %725 : vector<2x32xf32>
    %cst_163 = arith.constant 1.000000e+00 : f32
    %727 = vector.broadcast %cst_163 : f32 to vector<2x32xf32>
    %728 = arith.addf %727, %726 : vector<2x32xf32>
    %729 = arith.divf %727, %728 : vector<2x32xf32>
    %730 = vector.extract_strided_slice %692 {offsets = [0, 64], sizes = [2, 32], strides = [1, 1]} : vector<2x128xf32> to vector<2x32xf32>
    %731 = math.tanh %730 : vector<2x32xf32>
    %732 = vector.extract_strided_slice %692 {offsets = [0, 96], sizes = [2, 32], strides = [1, 1]} : vector<2x128xf32> to vector<2x32xf32>
    %733 = arith.negf %732 : vector<2x32xf32>
    %734 = math.exp %733 : vector<2x32xf32>
    %cst_164 = arith.constant 1.000000e+00 : f32
    %735 = vector.broadcast %cst_164 : f32 to vector<2x32xf32>
    %736 = arith.addf %735, %734 : vector<2x32xf32>
    %737 = arith.divf %735, %736 : vector<2x32xf32>
    %738 = arith.mulf %729, %681 : vector<2x32xf32>
    %739 = arith.mulf %723, %731 : vector<2x32xf32>
    %740 = arith.addf %738, %739 : vector<2x32xf32>
    %741 = math.tanh %740 : vector<2x32xf32>
    %742 = arith.mulf %737, %741 : vector<2x32xf32>
    %743 = arith.addi %6, %c7_i32_151 : i32
    %744 = vector.broadcast %743 : i32 to vector<2x1xi32>
    %745 = arith.cmpi slt, %744, %5 : vector<2x1xi32>
    %746 = arith.addi %8, %682 : i32
    %747 = vector.broadcast %746 : i32 to vector<2x1xi32>
    %748 = arith.cmpi slt, %747, %5 : vector<2x1xi32>
    %cst_165 = arith.constant 0.000000e+00 : f32
    %749 = vector.shape_cast %745 : vector<2x1xi1> to vector<2x1xi1>
    %750 = vector.broadcast %749 : vector<2x1xi1> to vector<2x32xi1>
    %751 = vector.broadcast %cst_165 : f32 to vector<2x32xf32>
    %752 = arith.select %750, %717, %751 : vector<2x32xi1>, vector<2x32xf32>
    %753 = arith.index_cast %c7_i32_151 : i32 to index
    %c0_166 = arith.constant 0 : index
    %c0_167 = arith.constant 0 : index
    %754 = vector.load %arg6[%753, %c0_166, %c0_167] : memref<8x2x32xf32, #tpu.memory_space<vmem>>, vector<1x2x32xf32>
    %755 = vector.shape_cast %754 : vector<1x2x32xf32> to vector<2x32xf32>
    %756 = vector.shape_cast %752 : vector<2x32xf32> to vector<1x2x32xf32>
    tpu.vector_store %arg6[%753, %c0_166, %c0_167], %756 {strides = array<i32>} : memref<8x2x32xf32, #tpu.memory_space<vmem>>, vector<1x2x32xf32>,
    %cst_168 = arith.constant 0.000000e+00 : f32
    %757 = vector.shape_cast %748 : vector<2x1xi1> to vector<2x1xi1>
    %758 = vector.broadcast %757 : vector<2x1xi1> to vector<2x32xi1>
    %759 = vector.broadcast %cst_168 : f32 to vector<2x32xf32>
    %760 = arith.select %758, %742, %759 : vector<2x32xi1>, vector<2x32xf32>
    %761 = arith.index_cast %682 : i32 to index
    %c0_169 = arith.constant 0 : index
    %c0_170 = arith.constant 0 : index
    %762 = vector.load %arg7[%761, %c0_169, %c0_170] : memref<8x2x32xf32, #tpu.memory_space<vmem>>, vector<1x2x32xf32>
    %763 = vector.shape_cast %762 : vector<1x2x32xf32> to vector<2x32xf32>
    %764 = vector.shape_cast %760 : vector<2x32xf32> to vector<1x2x32xf32>
    tpu.vector_store %arg7[%761, %c0_169, %c0_170], %764 {strides = array<i32>} : memref<8x2x32xf32, #tpu.memory_space<vmem>>, vector<1x2x32xf32>,
    %765 = vector.shape_cast %745 : vector<2x1xi1> to vector<2x1xi1>
    %766 = vector.broadcast %765 : vector<2x1xi1> to vector<2x32xi1>
    %767 = arith.select %766, %717, %672 : vector<2x32xi1>, vector<2x32xf32>
    %768 = vector.shape_cast %745 : vector<2x1xi1> to vector<2x1xi1>
    %769 = vector.broadcast %768 : vector<2x1xi1> to vector<2x32xi1>
    %770 = arith.select %769, %715, %675 : vector<2x32xi1>, vector<2x32xf32>
    %771 = vector.shape_cast %748 : vector<2x1xi1> to vector<2x1xi1>
    %772 = vector.broadcast %771 : vector<2x1xi1> to vector<2x32xi1>
    %773 = arith.select %772, %742, %678 : vector<2x32xi1>, vector<2x32xf32>
    %774 = vector.shape_cast %748 : vector<2x1xi1> to vector<2x1xi1>
    %775 = vector.broadcast %774 : vector<2x1xi1> to vector<2x32xi1>
    %776 = arith.select %775, %740, %681 : vector<2x32xi1>, vector<2x32xf32>
    %c8_i32_171 = arith.constant 8 : i32
    %c0_172 = arith.constant 0 : index
    %c0_173 = arith.constant 0 : index
    %c0_174 = arith.constant 0 : index
    %777 = vector.load %arg8[%c0_172, %c0_173, %c0_174] : memref<2x2x32xf32, #tpu.memory_space<vmem>>, vector<1x2x32xf32>
    %778 = vector.shape_cast %777 : vector<1x2x32xf32> to vector<2x32xf32>
    %779 = vector.shape_cast %767 : vector<2x32xf32> to vector<1x2x32xf32>
    tpu.vector_store %arg8[%c0_172, %c0_173, %c0_174], %779 {strides = array<i32>} : memref<2x2x32xf32, #tpu.memory_space<vmem>>, vector<1x2x32xf32>,
    %c0_175 = arith.constant 0 : index
    %c0_176 = arith.constant 0 : index
    %c0_177 = arith.constant 0 : index
    %780 = vector.load %arg9[%c0_175, %c0_176, %c0_177] : memref<2x2x32xf32, #tpu.memory_space<vmem>>, vector<1x2x32xf32>
    %781 = vector.shape_cast %780 : vector<1x2x32xf32> to vector<2x32xf32>
    %782 = vector.shape_cast %770 : vector<2x32xf32> to vector<1x2x32xf32>
    tpu.vector_store %arg9[%c0_175, %c0_176, %c0_177], %782 {strides = array<i32>} : memref<2x2x32xf32, #tpu.memory_space<vmem>>, vector<1x2x32xf32>,
    %c1_178 = arith.constant 1 : index
    %c0_179 = arith.constant 0 : index
    %c0_180 = arith.constant 0 : index
    %783 = vector.load %arg8[%c1_178, %c0_179, %c0_180] : memref<2x2x32xf32, #tpu.memory_space<vmem>>, vector<1x2x32xf32>
    %784 = vector.shape_cast %783 : vector<1x2x32xf32> to vector<2x32xf32>
    %785 = vector.shape_cast %773 : vector<2x32xf32> to vector<1x2x32xf32>
    tpu.vector_store %arg8[%c1_178, %c0_179, %c0_180], %785 {strides = array<i32>} : memref<2x2x32xf32, #tpu.memory_space<vmem>>, vector<1x2x32xf32>,
    %c1_181 = arith.constant 1 : index
    %c0_182 = arith.constant 0 : index
    %c0_183 = arith.constant 0 : index
    %786 = vector.load %arg9[%c1_181, %c0_182, %c0_183] : memref<2x2x32xf32, #tpu.memory_space<vmem>>, vector<1x2x32xf32>
    %787 = vector.shape_cast %786 : vector<1x2x32xf32> to vector<2x32xf32>
    %788 = vector.shape_cast %776 : vector<2x32xf32> to vector<1x2x32xf32>
    tpu.vector_store %arg9[%c1_181, %c0_182, %c0_183], %788 {strides = array<i32>} : memref<2x2x32xf32, #tpu.memory_space<vmem>>, vector<1x2x32xf32>,
    return
  }
  func.func @transform_0(%arg0: i32) -> (i32, i32, i32) {
    %c0_i32 = arith.constant 0 : i32
    %c0_i32_0 = arith.constant 0 : i32
    %c0_i32_1 = arith.constant 0 : i32
    return %arg0, %c0_i32, %c0_i32_0 : i32, i32, i32
  }
  func.func @transform_1(%arg0: i32) -> (i32, i32, i32) {
    %c0_i32 = arith.constant 0 : i32
    %0 = arith.subi %c0_i32, %arg0 : i32
    %c0_i32_0 = arith.constant 0 : i32
    %c0_i32_1 = arith.constant 0 : i32
    %c0_i32_2 = arith.constant 0 : i32
    return %0, %c0_i32_0, %c0_i32_1 : i32, i32, i32
  }
  func.func @transform_2(%arg0: i32) -> (i32, i32) {
    %c0_i32 = arith.constant 0 : i32
    %c0_i32_0 = arith.constant 0 : i32
    %c0_i32_1 = arith.constant 0 : i32
    return %c0_i32, %c0_i32_0 : i32, i32
  }
  func.func @transform_3(%arg0: i32) -> (i32, i32) {
    %c0_i32 = arith.constant 0 : i32
    %c0_i32_0 = arith.constant 0 : i32
    %c0_i32_1 = arith.constant 0 : i32
    return %c0_i32, %c0_i32_0 : i32, i32
  }
  func.func @transform_4(%arg0: i32) -> (i32, i32) {
    %c0_i32 = arith.constant 0 : i32
    %c0_i32_0 = arith.constant 0 : i32
    %c0_i32_1 = arith.constant 0 : i32
    return %c0_i32, %c0_i32_0 : i32, i32
  }
  func.func @transform_5(%arg0: i32) -> (i32, i32, i32) {
    %c0_i32 = arith.constant 0 : i32
    %c0_i32_0 = arith.constant 0 : i32
    %c0_i32_1 = arith.constant 0 : i32
    return %arg0, %c0_i32, %c0_i32_0 : i32, i32, i32
  }
  func.func @transform_6(%arg0: i32) -> (i32, i32, i32) {
    %c0_i32 = arith.constant 0 : i32
    %0 = arith.subi %c0_i32, %arg0 : i32
    %c0_i32_0 = arith.constant 0 : i32
    %c0_i32_1 = arith.constant 0 : i32
    %c0_i32_2 = arith.constant 0 : i32
    return %0, %c0_i32_0, %c0_i32_1 : i32, i32, i32
  }
  func.func @transform_7(%arg0: i32) -> (i32, i32, i32) {
    %c0_i32 = arith.constant 0 : i32
    %c0_i32_0 = arith.constant 0 : i32
    %c0_i32_1 = arith.constant 0 : i32
    %c0_i32_2 = arith.constant 0 : i32
    return %c0_i32, %c0_i32_0, %c0_i32_1 : i32, i32, i32
  }
  func.func @transform_8(%arg0: i32) -> (i32, i32, i32) {
    %c0_i32 = arith.constant 0 : i32
    %c0_i32_0 = arith.constant 0 : i32
    %c0_i32_1 = arith.constant 0 : i32
    %c0_i32_2 = arith.constant 0 : i32
    return %c0_i32, %c0_i32_0, %c0_i32_1 : i32, i32, i32
  }
}

</mosaic_0001>

<bundles_post_ra>
// kernel: custom_lstm_forward.2
= control target key start
LH: loop header
LB: loop body
LE: loop exit
PB: predicated region body
PF: predicated region fallthrough
CT: control target
= control target key end

     0   :  { %vm64_vm0 = vcmask 254976   ;;  %v2541_v0 = vmov 0.0   ;;  %vm2542_vm1 = vmmov 0   ;;  %vm88_vm2 = vcmask 261120   ;;  %s2543_s13 = smov 32   ;;  %s2545_s20 = smov 64   ;;  %s3482_s2 = inlined_call_operand.vmem [shape: f32[32,128], index: 2, kind: input, shape index: {}]   ;;  %s3483_s3 = inlined_call_operand.vmem [shape: f32[32,128], index: 3, kind: input, shape index: {}]   ;;  %s3484_s7 = inlined_call_operand.vmem [shape: f32[2,2,32], index: 7, kind: output, shape index: {2}]   ;;  %s3485_s8 = inlined_call_operand.vmem [shape: f32[2,2,32], index: 8, kind: output, shape index: {3}]   ;;  %s3486_s0 = inlined_call_operand.vmem [shape: f32[8,2,128], index: 0, kind: input, shape index: {}]   ;;  %s3487_s1 = inlined_call_operand.vmem [shape: f32[8,2,128], index: 1, kind: input, shape index: {}]   ;;  %s3488_s4 = inlined_call_operand.vmem [shape: s32[2,1], index: 4, kind: input, shape index: {}]   ;;  %s3489_s5 = inlined_call_operand.vmem [shape: f32[8,2,32], index: 5, kind: output, shape index: {0}]   ;;  %s3490_s6 = inlined_call_operand.vmem [shape: f32[8,2,32], index: 6, kind: output, shape index: {1}]  }
   0x1   :  { %2221 = vmatprep.subr.mxu0 %v2541_v0  ;;  %v2596_v1 = vld [vmem:[%s3482_s2 + $0x18] sm:$0xff]  ;;  %2232 = vmatprep.subr.mxu1 %v2541_v0  ;;  %v2602_v2 = vld [vmem:[%s3482_s2 + $0x10] sm:$0xff]  ;;  %65 = vst.msk [vmem:[%s3484_s7] sm:$0x3] %vm64_vm0, %v2541_v0  ;;  %66 = vst.msk [vmem:[%s3484_s7 + $0x2] sm:$0x3] %vm64_vm0, %v2541_v0 }
   0x2   :  { %v2607_v3 = vld [vmem:[%s3483_s3 + $0x18] sm:$0xff]  ;;  %67 = vst.msk [vmem:[%s3485_s8] sm:$0x3] %vm64_vm0, %v2541_v0  ;;  %68 = vst.msk [vmem:[%s3485_s8 + $0x2] sm:$0x3] %vm64_vm0, %v2541_v0  ;;  %2222 = vmatpush3.msra.mxu0 %v2596_v1  ;;  %v2634_v4 = vld [vmem:[%s3483_s3 + $0x10] sm:$0xff]  ;;  %2229 = vmatprep.mubr.msk.f32.mxu0 %vm2542_vm1, %v2541_v0 }
   0x3   :  { %2233 = vmatpush3.msra.mxu1 %v2607_v3  ;;  %2223 = vmatprep.subr.mxu0 %v2541_v0  ;;  %v2641_v5 = vld [vmem:[%s3482_s2 + $0x8] sm:$0xff]  ;;  %v2655_v7 = vld [vmem:[%s3482_s2] sm:$0xff]  ;;  %v2544_v21 = vmov 0  }
   0x4   :  { %2234 = vmatprep.subr.mxu1 %v2541_v0  ;;  %2224 = vmatpush3.msra.mxu0 %v2602_v2  ;;  %v2648_v6 = vld [vmem:[%s3483_s3 + $0x8] sm:$0xff]  ;;  %v2663_v8 = vld [vmem:[%s3483_s3] sm:$0xff] }
   0x5   :  { %2235 = vmatpush3.msra.mxu1 %v2634_v4  ;;  %2225 = vmatprep.subr.mxu0 %v2541_v0  ;;  %v87_v13 = vld [vmem:[%s3486_s0] sm:$0x3]  ;;  %v2064_v15 = vld [vmem:[%s3487_s1 + $0xe] sm:$0x3]  ;;  %v2071_v61 = vld [vmem:[%s3486_s0 + $0x2] sm:$0x3] }
   0x6   :  { %2236 = vmatprep.subr.mxu1 %v2541_v0  ;;  %2226 = vmatpush3.msra.mxu0 %v2641_v5  ;;  %v2729_v30 = vld [vmem:[%s3488_s4] sm:$0x3]  ;;  %s2546_s4 = smov 96  }
   0x7   :  { %2227 = vmatprep.subr.mxu0 %v2541_v0  ;;  %2237 = vmatpush3.msra.mxu1 %v2648_v6  ;;  %vm2068_vm3 = vcmp.gt.s32.totalorder %v2729_v30, 0  ;;  %vm2069_vm4 = vcmp.gt.s32.totalorder %v2729_v30, 7  ;;  %vm2077_vm7 = vcmp.gt.s32.totalorder %v2729_v30, 1  ;;  %vm2078_vm8 = vcmp.gt.s32.totalorder %v2729_v30, 6 }
   0x8   :  { %2228 = vmatpush3.msra.mxu0 %v2655_v7  ;;  %v2671_v9 = vld [vmem:[%s3484_s7] sm:$0x3]  ;;  %2238 = vmatprep.subr.mxu1 %v2541_v0  ;;  %v2677_v10 = vld [vmem:[%s3484_s7 + $0x2] sm:$0x3]  ;;  %v2734_v36 = vsel %vm2068_vm3, 1, %v2544_v21  ;;  %v2740_v38 = vsel %vm2069_vm4, 1, %v2544_v21 }
   0x9   :  { %v82_v11 = vld [vmem:[%s3485_s8] sm:$0x3]  ;;  %2230 = vmatmul.mubr.msk.f32.vlgmr.msra.gmra.mxu0 %vm88_vm2, %v2671_v9  ;;  %2239 = vmatpush3.msra.mxu1 %v2663_v8  ;;  %v2062_v12 = vld [vmem:[%s3485_s8 + $0x2] sm:$0x3]  ;;  %vm2087_vm11 = vcmp.gt.s32.totalorder %v2729_v30, 2  ;;  %vm2088_vm12 = vcmp.gt.s32.totalorder %v2729_v30, 5 }
   0xa   :  { %2240 = vmatprep.mubr.msk.f32.mxu1 %vm2542_vm1, %v2541_v0  ;;  %247 = vrot.lane.b32.xlu1 %v82_v11, %s2543_s13  ;;  %vm2097_vm15 = vcmp.gt.s32.totalorder %v2729_v30, 3  ;;  %vm2098_vm3 = vcmp.gt.s32.totalorder %v2729_v30, 4 }
   0xb   :  { %2241 = vmatmul.mubr.msk.f32.vlgmr.msra.gmra.mxu1 %vm88_vm2, %v2677_v10  ;;  %2243 = vmatprep.subr.mxu0 %v2541_v0 }
   0xc   :  { %2244 = vmatpush3.msra.mxu0 %v2596_v1  ;;  %2254 = vmatprep.subr.mxu1 %v2541_v0 }
   0xd   :  { %2245 = vmatprep.subr.mxu0 %v2541_v0  ;;  %2255 = vmatpush3.msra.mxu1 %v2607_v3 }
   0xe   :  { %275 = vrot.lane.b32.xlu1 %v2062_v12, %s2543_s13  ;;  %2246 = vmatpush3.msra.mxu0 %v2602_v2 }
   0xf   :  { %2247 = vmatprep.subr.mxu0 %v2541_v0  ;;  %2256 = vmatprep.subr.mxu1 %v2541_v0 }
  0x10   :  { %2248 = vmatpush3.msra.mxu0 %v2641_v5  ;;  %2251 = vmatprep.mubr.msk.f32.mxu0 %vm2542_vm1, %v2541_v0 }
  0x11   :  { %2249 = vmatprep.subr.mxu0 %v2541_v0  ;;  %2257 = vmatpush3.msra.mxu1 %v2634_v4 }
  0x12   :  { %2250 = vmatpush3.msra.mxu0 %v2655_v7  ;;  %2258 = vmatprep.subr.mxu1 %v2541_v0 }
  0x13   :  { %2259 = vmatpush3.msra.mxu1 %v2648_v6  ;;  %2262 = vmatprep.mubr.msk.f32.mxu1 %vm2542_vm1, %v2541_v0 }
  0x14   :  { %2260 = vmatprep.subr.mxu1 %v2541_v0  ;;  %2265 = vmatprep.subr.mxu0 %v2541_v0 }
  0x15   :  { %2261 = vmatpush3.msra.mxu1 %v2663_v8  ;;  %2403 = vset.pattern.permute.xlu0 %v2544_v21 }
  0x16   :  { %2276 = vmatprep.subr.mxu1 %v2541_v0  ;;  %2404 = vset.pattern.permute.xlu1 %v2544_v21 }
  0x7c   :  { %v2743_v39 = vpop.permute.xlu1 %247 }
  0x80   :  { %v2746_v41 = vpop.permute.xlu1 %275 }
  0xc9   :  { %v158_v14 = vpop.f32.mrf.mxu0 }
  0xca   :  { %v162_v16 = vadd.f32 %v158_v14, %v87_v13 }
  0xcb   :  { %v2231_v17 = vpop.f32.mrf.mxu0  ;;  %v234_v18 = vpop.f32.mrf.mxu1 }
  0xcc   :  { %2405 = vtanh.f32 %v162_v16  ;;  %v238_v19 = vadd.f32 %v2064_v15, %v234_v18  ;;  %v2066_v24 = vmul.f32 -1.442695, %v162_v16 }
  0xcd   :  { %v2242_v20 = vpop.f32.mrf.mxu1 }
  0xce   :  { %2407 = vtanh.f32 %v238_v19  ;;  %v2067_v25 = vmul.f32 -1.442695, %v238_v19 }
  0xcf   :  { %2409 = vpow2.f32 %v2066_v24 }
  0xd0   :  { %2411 = vpow2.f32 %v2067_v25 }
  0xd9   :  { %v2406_v22 = vpop.eup %2405 }
  0xda   :  { %252 = vrot.lane.b32.xlu0 %v2406_v22, %s2545_s20 }
  0xdb   :  { %v2408_v23 = vpop.eup %2407 }
  0xdc   :  { %v2410_v26 = vpop.eup %2409 }
  0xdd   :  { %v242_v27 = vadd.f32 1.0, %v2410_v26  ;;  %v2412_v28 = vpop.eup %2411 }
  0xde   :  { %280 = vrot.lane.b32.xlu0 %v2408_v23, %s2545_s20  ;;  %v270_v29 = vadd.f32 1.0, %v2412_v28  ;;  %v2818_v28 = vsel %vm2077_vm7, 1, %v2544_v21 }
  0xdf   :  { %2413 = vrcp.f32 %v242_v27 }
  0xe0   :  { %2415 = vrcp.f32 %v270_v29 }
  0xec   :  { %v2414_v31 = vpop.eup %2413 }
  0xed   :  { %v2416_v34 = vpop.eup %2415  ;;  %v250_v40 = vmul.f32 %v2414_v31, %v2743_v39 }
  0xee   :  { %v278_v44 = vmul.f32 %v2416_v34, %v2746_v41 }
 0x14c   :  { %v253_v32 = vpop.permute.xlu0 %252 }
 0x14d   :  { %v255_v33 = vmul.f32 %v2414_v31, %v253_v32 }
 0x14f   :  { %257 = vrot.lane.b32.xlu0 %v255_v33, %s2543_s13 }
 0x150   :  { %v281_v35 = vpop.permute.xlu0 %280 }
 0x151   :  { %v283_v37 = vmul.f32 %v2416_v34, %v281_v35 }
 0x153   :  { %285 = vrot.lane.b32.xlu1 %v283_v37, %s2543_s13  ;;  %302 = vperm.xlu0 %2403, %v2734_v36  }
 0x157   :  { %314 = vperm.xlu1 %2404, %v2740_v38  }
 0x1c1   :  { %v258_v42 = vpop.permute.xlu0 %257 }
 0x1c2   :  { %v2748_v43 = vadd.f32 %v258_v42, %v250_v40 }
 0x1c4   :  { %2417 = vtanh.f32 %v2748_v43 }
 0x1c5   :  { %v286_v45 = vpop.permute.xlu1 %285 }
 0x1c6   :  { %v2752_v46 = vadd.f32 %v286_v45, %v278_v44 }
 0x1c8   :  { %2419 = vtanh.f32 %v2752_v46 }
 0x1ce   :  { %v2763_v50 = vpop.permute.xlu0 %302 }
 0x1cf   :  { %vm304_vm5 = vcmp.eq.s32.totalorder %v2763_v50, 1 }
 0x1d0   :  { %v2831_v32 = vsel %vm304_vm5, %v2748_v43, %v2743_v39 }
 0x1d1   :  { %v2418_v47 = vpop.eup %2417 }
 0x1d2   :  { %263 = vrot.lane.b32.xlu1 %v2418_v47, %s2545_s20  ;;  %v2761_v49 = vpop.permute.xlu1 %314 }
 0x1d3   :  { %vm316_vm6 = vcmp.eq.s32.totalorder %v2761_v49, 1 }
 0x1d4   :  { %v2840_v37 = vsel %vm316_vm6, %v2752_v46, %v2746_v41 }
 0x1d5   :  { %v2420_v48 = vpop.eup %2419 }
 0x1d6   :  { %291 = vrot.lane.b32.xlu0 %v2420_v48, %s2545_s20  ;;  %324 = vrot.lane.b32.xlu1 %v2671_v9, %s2546_s4 }
 0x1da   :  { %329 = vrot.lane.b32.xlu0 %v2677_v10, %s2546_s4  ;;  %v2073_v10 = vld [vmem:[%s3487_s1 + $0xc] sm:$0x3] }
 0x244   :  { %v264_v51 = vpop.permute.xlu1 %263 }
 0x245   :  { %v2765_v52 = vmul.f32 %v2414_v31, %v264_v51  ;;  %v2824_v31 = vsel %vm2078_vm8, 1, %v2544_v21 }
 0x248   :  { %v292_v53 = vpop.permute.xlu0 %291  ;;  %v325_v54 = vpop.permute.xlu1 %324 }
 0x249   :  { %v2771_v55 = vsel %vm304_vm5, %v2765_v52, %v325_v54  ;;  %v2775_v56 = vmul.f32 %v2416_v34, %v292_v53 }
 0x24a   :  { %337 = vrot.lane.b32.xlu1 %v2771_v55, %s2543_s13 }
 0x24c   :  { %v330_v57 = vpop.permute.xlu0 %329 }
 0x24d   :  { %v2781_v58 = vsel %vm316_vm6, %v2775_v56, %v330_v57 }
 0x24e   :  { %415 = vrot.lane.b32.xlu0 %v2781_v58, %s2543_s13 }
 0x2bc   :  { %v338_v59 = vpop.permute.xlu1 %337 }
 0x2bd   :  { %2252 = vmatmul.mubr.msk.f32.vlgmr.msra.gmra.mxu0 %vm88_vm2, %v338_v59 }
 0x2be   :  { %2266 = vmatpush3.msra.mxu0 %v2596_v1  ;;  %2273 = vmatprep.mubr.msk.f32.mxu0 %vm2542_vm1, %v2541_v0 }
 0x2bf   :  { %2267 = vmatprep.subr.mxu0 %v2541_v0 }
 0x2c0   :  { %v416_v60 = vpop.permute.xlu0 %415  ;;  %2268 = vmatpush3.msra.mxu0 %v2602_v2 }
 0x2c1   :  { %2263 = vmatmul.mubr.msk.f32.vlgmr.msra.gmra.mxu1 %vm88_vm2, %v416_v60  ;;  %2269 = vmatprep.subr.mxu0 %v2541_v0 }
 0x2c2   :  { %2270 = vmatpush3.msra.mxu0 %v2641_v5  ;;  %2277 = vmatpush3.msra.mxu1 %v2607_v3 }
 0x2c3   :  { %2271 = vmatprep.subr.mxu0 %v2541_v0  ;;  %2278 = vmatprep.subr.mxu1 %v2541_v0 }
 0x2c4   :  { %2272 = vmatpush3.msra.mxu0 %v2655_v7  ;;  %2279 = vmatpush3.msra.mxu1 %v2634_v4 }
 0x2c5   :  { %2280 = vmatprep.subr.mxu1 %v2541_v0  ;;  %2284 = vmatprep.mubr.msk.f32.mxu1 %vm2542_vm1, %v2541_v0 }
 0x2c6   :  { %2281 = vmatpush3.msra.mxu1 %v2648_v6  ;;  %2287 = vmatprep.subr.mxu0 %v2541_v0 }
 0x2c7   :  { %2282 = vmatprep.subr.mxu1 %v2541_v0 }
 0x2c8   :  { %2283 = vmatpush3.msra.mxu1 %v2663_v8 }
 0x2c9   :  { %2298 = vmatprep.subr.mxu1 %v2541_v0 }
 0x37d   :  { %v407_v62 = vpop.f32.mrf.mxu0 }
 0x37e   :  { %v411_v63 = vadd.f32 %v2071_v61, %v407_v62  ;;  %v2083_v62 = vld [vmem:[%s3487_s1 + $0xa] sm:$0x3] }
 0x37f   :  { %v2253_v9 = vpop.f32.mrf.mxu0 }
 0x380   :  { %2421 = vtanh.f32 %v411_v63  ;;  %v2075_v16 = vmul.f32 -1.442695, %v411_v63 }
 0x381   :  { %v485_v11 = vpop.f32.mrf.mxu1 }
 0x382   :  { %v489_v12 = vadd.f32 %v2073_v10, %v485_v11 }
 0x383   :  { %v2264_v13 = vpop.f32.mrf.mxu1 }
 0x384   :  { %2423 = vtanh.f32 %v489_v12  ;;  %v2076_v17 = vmul.f32 -1.442695, %v489_v12 }
 0x385   :  { %2425 = vpow2.f32 %v2075_v16 }
 0x386   :  { %2427 = vpow2.f32 %v2076_v17 }
 0x38d   :  { %v2422_v14 = vpop.eup %2421 }
 0x38e   :  { %499 = vrot.lane.b32.xlu1 %v2422_v14, %s2545_s20 }
 0x391   :  { %v2424_v15 = vpop.eup %2423 }
 0x392   :  { %523 = vrot.lane.b32.xlu0 %v2424_v15, %s2545_s20  ;;  %v2426_v18 = vpop.eup %2425 }
 0x393   :  { %v493_v19 = vadd.f32 1.0, %v2426_v18  ;;  %v2428_v20 = vpop.eup %2427 }
 0x394   :  { %v517_v22 = vadd.f32 1.0, %v2428_v20 }
 0x395   :  { %2429 = vrcp.f32 %v493_v19 }
 0x396   :  { %2431 = vrcp.f32 %v517_v22 }
 0x3a2   :  { %v2430_v23 = vpop.eup %2429 }
 0x3a3   :  { %v2432_v26 = vpop.eup %2431  ;;  %v497_v33 = vmul.f32 %v2430_v23, %v2831_v32 }
 0x3a4   :  { %v521_v40 = vmul.f32 %v2432_v26, %v2840_v37 }
 0x400   :  { %v500_v24 = vpop.permute.xlu1 %499 }
 0x401   :  { %v502_v25 = vmul.f32 %v2430_v23, %v500_v24 }
 0x403   :  { %504 = vrot.lane.b32.xlu1 %v502_v25, %s2543_s13  ;;  %v2908_v25 = vsel %vm2087_vm11, 1, %v2544_v21 }
 0x404   :  { %v524_v27 = vpop.permute.xlu0 %523 }
 0x405   :  { %v526_v29 = vmul.f32 %v2432_v26, %v524_v27  ;;  %v2914_v27 = vsel %vm2088_vm12, 1, %v2544_v21 }
 0x407   :  { %528 = vrot.lane.b32.xlu0 %v526_v29, %s2543_s13  ;;  %546 = vperm.xlu1 %2404, %v2818_v28  }
 0x40b   :  { %558 = vperm.xlu0 %2403, %v2824_v31  }
 0x475   :  { %v505_v34 = vpop.permute.xlu1 %504 }
 0x476   :  { %v2834_v35 = vadd.f32 %v505_v34, %v497_v33 }
 0x478   :  { %2433 = vtanh.f32 %v2834_v35 }
 0x479   :  { %v529_v42 = vpop.permute.xlu0 %528 }
 0x47a   :  { %v2844_v44 = vadd.f32 %v529_v42, %v521_v40 }
 0x47c   :  { %2435 = vtanh.f32 %v2844_v44 }
 0x482   :  { %v2849_v45 = vpop.permute.xlu1 %546 }
 0x483   :  { %vm548_vm9 = vcmp.eq.s32.totalorder %v2849_v45, 1 }
 0x484   :  { %v2921_v29 = vsel %vm548_vm9, %v2834_v35, %v2831_v32 }
 0x485   :  { %v2434_v39 = vpop.eup %2433 }
 0x486   :  { %510 = vrot.lane.b32.xlu1 %v2434_v39, %s2545_s20  ;;  %v2851_v47 = vpop.permute.xlu0 %558 }
 0x487   :  { %vm560_vm10 = vcmp.eq.s32.totalorder %v2851_v47, 1 }
 0x488   :  { %v2930_v42 = vsel %vm560_vm10, %v2844_v44, %v2840_v37 }
 0x489   :  { %v2436_v43 = vpop.eup %2435 }
 0x48a   :  { %534 = vrot.lane.b32.xlu0 %v2436_v43, %s2545_s20 }
 0x4f8   :  { %v511_v41 = vpop.permute.xlu1 %510 }
 0x4f9   :  { %v2853_v46 = vmul.f32 %v2430_v23, %v511_v41 }
 0x4fb   :  { %v2860_v48 = vsel %vm548_vm9, %v2853_v46, %v2771_v55 }
 0x4fc   :  { %v535_v51 = vpop.permute.xlu0 %534  ;;  %575 = vrot.lane.b32.xlu1 %v2860_v48, %s2543_s13 }
 0x4fd   :  { %v2864_v53 = vmul.f32 %v2432_v26, %v535_v51 }
 0x4ff   :  { %v2871_v54 = vsel %vm560_vm10, %v2864_v53, %v2781_v58  ;;  %v2081_v58 = vld [vmem:[%s3486_s0 + $0x4] sm:$0x3]  ;;  %v561_v50 = vsel %vm560_vm10, %v2864_v53, 0.0 }
 0x500   :  { %653 = vrot.lane.b32.xlu0 %v2871_v54, %s2543_s13 }
 0x56e   :  { %v576_v57 = vpop.permute.xlu1 %575 }
 0x56f   :  { %2274 = vmatmul.mubr.msk.f32.vlgmr.msra.gmra.mxu0 %vm88_vm2, %v576_v57 }
 0x570   :  { %2288 = vmatpush3.msra.mxu0 %v2596_v1  ;;  %2295 = vmatprep.mubr.msk.f32.mxu0 %vm2542_vm1, %v2541_v0 }
 0x571   :  { %2289 = vmatprep.subr.mxu0 %v2541_v0 }
 0x572   :  { %v654_v55 = vpop.permute.xlu0 %653  ;;  %2290 = vmatpush3.msra.mxu0 %v2602_v2 }
 0x573   :  { %2285 = vmatmul.mubr.msk.f32.vlgmr.msra.gmra.mxu1 %vm88_vm2, %v654_v55  ;;  %2291 = vmatprep.subr.mxu0 %v2541_v0 }
 0x574   :  { %2292 = vmatpush3.msra.mxu0 %v2641_v5  ;;  %2299 = vmatpush3.msra.mxu1 %v2607_v3 }
 0x575   :  { %2293 = vmatprep.subr.mxu0 %v2541_v0  ;;  %2300 = vmatprep.subr.mxu1 %v2541_v0 }
 0x576   :  { %2294 = vmatpush3.msra.mxu0 %v2655_v7  ;;  %2301 = vmatpush3.msra.mxu1 %v2634_v4 }
 0x577   :  { %2302 = vmatprep.subr.mxu1 %v2541_v0  ;;  %2306 = vmatprep.mubr.msk.f32.mxu1 %vm2542_vm1, %v2541_v0 }
 0x578   :  { %2303 = vmatpush3.msra.mxu1 %v2648_v6  ;;  %2309 = vmatprep.subr.mxu0 %v2541_v0 }
 0x579   :  { %2304 = vmatprep.subr.mxu1 %v2541_v0 }
 0x57a   :  { %2305 = vmatpush3.msra.mxu1 %v2663_v8 }
 0x57b   :  { %2320 = vmatprep.subr.mxu1 %v2541_v0 }
 0x62f   :  { %v645_v59 = vpop.f32.mrf.mxu0 }
 0x630   :  { %v649_v60 = vadd.f32 %v2081_v58, %v645_v59 }
 0x631   :  { %v2275_v61 = vpop.f32.mrf.mxu0 }
 0x632   :  { %2437 = vtanh.f32 %v649_v60  ;;  %v2085_v13 = vmul.f32 -1.442695, %v649_v60 }
 0x633   :  { %v723_v63 = vpop.f32.mrf.mxu1 }
 0x634   :  { %v727_v9 = vadd.f32 %v2083_v62, %v723_v63 }
 0x635   :  { %v2286_v10 = vpop.f32.mrf.mxu1 }
 0x636   :  { %2439 = vtanh.f32 %v727_v9  ;;  %v2086_v14 = vmul.f32 -1.442695, %v727_v9  ;;  %v2093_v10 = vld [vmem:[%s3487_s1 + $0x8] sm:$0x3] }
 0x637   :  { %2441 = vpow2.f32 %v2085_v13 }
 0x638   :  { %2443 = vpow2.f32 %v2086_v14 }
 0x63f   :  { %v2438_v11 = vpop.eup %2437 }
 0x640   :  { %737 = vrot.lane.b32.xlu1 %v2438_v11, %s2545_s20 }
 0x643   :  { %v2440_v12 = vpop.eup %2439 }
 0x644   :  { %761 = vrot.lane.b32.xlu0 %v2440_v12, %s2545_s20  ;;  %v2442_v15 = vpop.eup %2441 }
 0x645   :  { %v731_v16 = vadd.f32 1.0, %v2442_v15  ;;  %v2444_v17 = vpop.eup %2443 }
 0x646   :  { %v755_v18 = vadd.f32 1.0, %v2444_v17 }
 0x647   :  { %2445 = vrcp.f32 %v731_v16 }
 0x648   :  { %2447 = vrcp.f32 %v755_v18 }
 0x654   :  { %v2446_v19 = vpop.eup %2445 }
 0x655   :  { %v2448_v23 = vpop.eup %2447  ;;  %v735_v33 = vmul.f32 %v2446_v19, %v2921_v29 }
 0x656   :  { %v759_v39 = vmul.f32 %v2448_v23, %v2930_v42 }
 0x6b2   :  { %v738_v20 = vpop.permute.xlu1 %737 }
 0x6b3   :  { %v740_v22 = vmul.f32 %v2446_v19, %v738_v20 }
 0x6b5   :  { %742 = vrot.lane.b32.xlu1 %v740_v22, %s2543_s13 }
 0x6b6   :  { %v762_v24 = vpop.permute.xlu0 %761 }
 0x6b7   :  { %v764_v26 = vmul.f32 %v2448_v23, %v762_v24 }
 0x6b9   :  { %766 = vrot.lane.b32.xlu0 %v764_v26, %s2543_s13  ;;  %784 = vperm.xlu1 %2404, %v2908_v25  }
 0x6bd   :  { %796 = vperm.xlu0 %2403, %v2914_v27  }
 0x727   :  { %v743_v34 = vpop.permute.xlu1 %742 }
 0x728   :  { %v2924_v40 = vadd.f32 %v743_v34, %v735_v33 }
 0x72a   :  { %2449 = vtanh.f32 %v2924_v40 }
 0x72b   :  { %v767_v43 = vpop.permute.xlu0 %766 }
 0x72c   :  { %v2934_v41 = vadd.f32 %v767_v43, %v759_v39  ;;  %v2998_v39 = vsel %vm2097_vm15, 1, %v2544_v21 }
 0x72e   :  { %2451 = vtanh.f32 %v2934_v41 }
 0x734   :  { %v2939_v51 = vpop.permute.xlu1 %784 }
 0x735   :  { %vm786_vm13 = vcmp.eq.s32.totalorder %v2939_v51, 1 }
 0x737   :  { %v2450_v32 = vpop.eup %2449 }
 0x738   :  { %748 = vrot.lane.b32.xlu1 %v2450_v32, %s2545_s20  ;;  %v2941_v57 = vpop.permute.xlu0 %796  ;;  %v3004_v32 = vsel %vm2098_vm3, 1, %v2544_v21 }
 0x739   :  { %vm798_vm14 = vcmp.eq.s32.totalorder %v2941_v57, 1 }
 0x73a   :  { %v3020_v30 = vsel %vm798_vm14, %v2934_v41, %v2930_v42 }
 0x73b   :  { %v2452_v35 = vpop.eup %2451 }
 0x73c   :  { %772 = vrot.lane.b32.xlu0 %v2452_v35, %s2545_s20  ;;  %v3011_v35 = vsel %vm786_vm13, %v2924_v40, %v2921_v29 }
 0x7aa   :  { %v749_v37 = vpop.permute.xlu1 %748 }
 0x7ab   :  { %v2943_v44 = vmul.f32 %v2446_v19, %v749_v37 }
 0x7ad   :  { %v2950_v55 = vsel %vm786_vm13, %v2943_v44, %v2860_v48 }
 0x7ae   :  { %v773_v58 = vpop.permute.xlu0 %772  ;;  %813 = vrot.lane.b32.xlu1 %v2950_v55, %s2543_s13 }
 0x7af   :  { %v2954_v59 = vmul.f32 %v2448_v23, %v773_v58 }
 0x7b1   :  { %v2961_v60 = vsel %vm798_vm14, %v2954_v59, %v2871_v54  ;;  %v2091_v54 = vld [vmem:[%s3486_s0 + $0x6] sm:$0x3]  ;;  %v799_v49 = vsel %vm798_vm14, %v2954_v59, 0.0 }
 0x7b2   :  { %891 = vrot.lane.b32.xlu0 %v2961_v60, %s2543_s13 }
 0x820   :  { %v814_v61 = vpop.permute.xlu1 %813 }
 0x821   :  { %2296 = vmatmul.mubr.msk.f32.vlgmr.msra.gmra.mxu0 %vm88_vm2, %v814_v61 }
 0x822   :  { %2310 = vmatpush3.msra.mxu0 %v2596_v1  ;;  %2317 = vmatprep.mubr.msk.f32.mxu0 %vm2542_vm1, %v2541_v0 }
 0x823   :  { %2311 = vmatprep.subr.mxu0 %v2541_v0 }
 0x824   :  { %v892_v48 = vpop.permute.xlu0 %891  ;;  %2312 = vmatpush3.msra.mxu0 %v2602_v2 }
 0x825   :  { %2307 = vmatmul.mubr.msk.f32.vlgmr.msra.gmra.mxu1 %vm88_vm2, %v892_v48  ;;  %2313 = vmatprep.subr.mxu0 %v2541_v0 }
 0x826   :  { %2314 = vmatpush3.msra.mxu0 %v2641_v5  ;;  %2321 = vmatpush3.msra.mxu1 %v2607_v3 }
 0x827   :  { %2315 = vmatprep.subr.mxu0 %v2541_v0  ;;  %2322 = vmatprep.subr.mxu1 %v2541_v0 }
 0x828   :  { %2316 = vmatpush3.msra.mxu0 %v2655_v7  ;;  %2323 = vmatpush3.msra.mxu1 %v2634_v4 }
 0x829   :  { %2324 = vmatprep.subr.mxu1 %v2541_v0  ;;  %2328 = vmatprep.mubr.msk.f32.mxu1 %vm2542_vm1, %v2541_v0 }
 0x82a   :  { %2325 = vmatpush3.msra.mxu1 %v2648_v6  ;;  %2331 = vmatprep.subr.mxu0 %v2541_v0 }
 0x82b   :  { %2326 = vmatprep.subr.mxu1 %v2541_v0 }
 0x82c   :  { %2327 = vmatpush3.msra.mxu1 %v2663_v8 }
 0x82d   :  { %2342 = vmatprep.subr.mxu1 %v2541_v0 }
 0x8e1   :  { %v883_v62 = vpop.f32.mrf.mxu0 }
 0x8e2   :  { %v887_v63 = vadd.f32 %v2091_v54, %v883_v62 }
 0x8e3   :  { %v2297_v9 = vpop.f32.mrf.mxu0 }
 0x8e4   :  { %2453 = vtanh.f32 %v887_v63  ;;  %v2095_v16 = vmul.f32 -1.442695, %v887_v63 }
 0x8e5   :  { %v961_v11 = vpop.f32.mrf.mxu1 }
 0x8e6   :  { %v965_v12 = vadd.f32 %v2093_v10, %v961_v11 }
 0x8e7   :  { %v2308_v13 = vpop.f32.mrf.mxu1 }
 0x8e8   :  { %2455 = vtanh.f32 %v965_v12  ;;  %v2096_v17 = vmul.f32 -1.442695, %v965_v12 }
 0x8e9   :  { %2457 = vpow2.f32 %v2095_v16 }
 0x8ea   :  { %2459 = vpow2.f32 %v2096_v17  ;;  %v2103_v17 = vld [vmem:[%s3487_s1 + $0x6] sm:$0x3] }
 0x8f1   :  { %v2454_v14 = vpop.eup %2453 }
 0x8f2   :  { %975 = vrot.lane.b32.xlu1 %v2454_v14, %s2545_s20 }
 0x8f5   :  { %v2456_v15 = vpop.eup %2455 }
 0x8f6   :  { %999 = vrot.lane.b32.xlu0 %v2456_v15, %s2545_s20  ;;  %v2458_v18 = vpop.eup %2457 }
 0x8f7   :  { %v969_v19 = vadd.f32 1.0, %v2458_v18  ;;  %v2460_v20 = vpop.eup %2459 }
 0x8f8   :  { %v993_v22 = vadd.f32 1.0, %v2460_v20 }
 0x8f9   :  { %2461 = vrcp.f32 %v969_v19 }
 0x8fa   :  { %2463 = vrcp.f32 %v993_v22 }
 0x906   :  { %v2462_v23 = vpop.eup %2461 }
 0x907   :  { %v2464_v33 = vpop.eup %2463  ;;  %v973_v37 = vmul.f32 %v2462_v23, %v3011_v35 }
 0x908   :  { %v997_v21 = vmul.f32 %v2464_v33, %v3020_v30 }
 0x964   :  { %v976_v24 = vpop.permute.xlu1 %975 }
 0x965   :  { %v978_v26 = vmul.f32 %v2462_v23, %v976_v24 }
 0x967   :  { %980 = vrot.lane.b32.xlu1 %v978_v26, %s2543_s13 }
 0x968   :  { %v1000_v34 = vpop.permute.xlu0 %999 }
 0x969   :  { %v1002_v43 = vmul.f32 %v2464_v33, %v1000_v34 }
 0x96b   :  { %1004 = vrot.lane.b32.xlu0 %v1002_v43, %s2543_s13  ;;  %1022 = vperm.xlu1 %2404, %v2998_v39  }
 0x96f   :  { %1034 = vperm.xlu0 %2403, %v3004_v32  }
 0x9d9   :  { %v981_v58 = vpop.permute.xlu1 %980 }
 0x9da   :  { %v3014_v61 = vadd.f32 %v981_v58, %v973_v37 }
 0x9dc   :  { %2465 = vtanh.f32 %v3014_v61 }
 0x9dd   :  { %v1005_v48 = vpop.permute.xlu0 %1004 }
 0x9de   :  { %v3024_v54 = vadd.f32 %v1005_v48, %v997_v21 }
 0x9e0   :  { %2467 = vtanh.f32 %v3024_v54 }
 0x9e6   :  { %v3029_v62 = vpop.permute.xlu1 %1022 }
 0x9e7   :  { %vm1024_vm4 = vcmp.eq.s32.totalorder %v3029_v62, 1 }
 0x9e9   :  { %v2466_v29 = vpop.eup %2465 }
 0x9ea   :  { %986 = vrot.lane.b32.xlu1 %v2466_v29, %s2545_s20  ;;  %v3031_v63 = vpop.permute.xlu0 %1034 }
 0x9eb   :  { %vm1036_vm7 = vcmp.eq.s32.totalorder %v3031_v63, 1 }
 0x9ed   :  { %v2468_v40 = vpop.eup %2467 }
 0x9ee   :  { %1010 = vrot.lane.b32.xlu0 %v2468_v40, %s2545_s20 }
 0xa5c   :  { %v987_v42 = vpop.permute.xlu1 %986 }
 0xa5d   :  { %v3033_v41 = vmul.f32 %v2462_v23, %v987_v42 }
 0xa5f   :  { %v3040_v9 = vsel %vm1024_vm4, %v3033_v41, %v2950_v55 }
 0xa60   :  { %v1011_v10 = vpop.permute.xlu0 %1010  ;;  %1051 = vrot.lane.b32.xlu1 %v3040_v9, %s2543_s13 }
 0xa61   :  { %v3044_v11 = vmul.f32 %v2464_v33, %v1011_v10  ;;  %v3093_v10 = vsel %vm1024_vm4, %v3014_v61, %v3011_v35 }
 0xa63   :  { %v3051_v12 = vsel %vm1036_vm7, %v3044_v11, %v2961_v60  ;;  %v2101_v60 = vld [vmem:[%s3486_s0 + $0x8] sm:$0x3]  ;;  %v1037_v45 = vsel %vm1036_vm7, %v3044_v11, 0.0 }
 0xa64   :  { %1129 = vrot.lane.b32.xlu0 %v3051_v12, %s2543_s13 }
 0xad2   :  { %v1052_v13 = vpop.permute.xlu1 %1051 }
 0xad3   :  { %2318 = vmatmul.mubr.msk.f32.vlgmr.msra.gmra.mxu0 %vm88_vm2, %v1052_v13 }
 0xad4   :  { %2332 = vmatpush3.msra.mxu0 %v2596_v1  ;;  %2339 = vmatprep.mubr.msk.f32.mxu0 %vm2542_vm1, %v2541_v0 }
 0xad5   :  { %2333 = vmatprep.subr.mxu0 %v2541_v0 }
 0xad6   :  { %v1130_v55 = vpop.permute.xlu0 %1129  ;;  %2334 = vmatpush3.msra.mxu0 %v2602_v2 }
 0xad7   :  { %2329 = vmatmul.mubr.msk.f32.vlgmr.msra.gmra.mxu1 %vm88_vm2, %v1130_v55  ;;  %2335 = vmatprep.subr.mxu0 %v2541_v0 }
 0xad8   :  { %2336 = vmatpush3.msra.mxu0 %v2641_v5  ;;  %2343 = vmatpush3.msra.mxu1 %v2607_v3 }
 0xad9   :  { %2337 = vmatprep.subr.mxu0 %v2541_v0  ;;  %2344 = vmatprep.subr.mxu1 %v2541_v0 }
 0xada   :  { %2338 = vmatpush3.msra.mxu0 %v2655_v7  ;;  %2345 = vmatpush3.msra.mxu1 %v2634_v4 }
 0xadb   :  { %2346 = vmatprep.subr.mxu1 %v2541_v0  ;;  %2350 = vmatprep.mubr.msk.f32.mxu1 %vm2542_vm1, %v2541_v0 }
 0xadc   :  { %2347 = vmatpush3.msra.mxu1 %v2648_v6  ;;  %2353 = vmatprep.subr.mxu0 %v2541_v0 }
 0xadd   :  { %2348 = vmatprep.subr.mxu1 %v2541_v0 }
 0xade   :  { %2349 = vmatpush3.msra.mxu1 %v2663_v8 }
 0xadf   :  { %2364 = vmatprep.subr.mxu1 %v2541_v0 }
 0xb93   :  { %v1121_v14 = vpop.f32.mrf.mxu0 }
 0xb94   :  { %v1125_v15 = vadd.f32 %v2101_v60, %v1121_v14  ;;  %v3102_v14 = vsel %vm1036_vm7, %v3024_v54, %v3020_v30 }
 0xb95   :  { %v2319_v16 = vpop.f32.mrf.mxu0 }
 0xb96   :  { %2469 = vtanh.f32 %v1125_v15  ;;  %v2105_v24 = vmul.f32 -1.442695, %v1125_v15 }
 0xb97   :  { %v1199_v18 = vpop.f32.mrf.mxu1 }
 0xb98   :  { %v1203_v19 = vadd.f32 %v2103_v17, %v1199_v18 }
 0xb99   :  { %v2330_v20 = vpop.f32.mrf.mxu1 }
 0xb9a   :  { %2471 = vtanh.f32 %v1203_v19  ;;  %v2106_v26 = vmul.f32 -1.442695, %v1203_v19 }
 0xb9b   :  { %2473 = vpow2.f32 %v2105_v24 }
 0xb9c   :  { %2475 = vpow2.f32 %v2106_v26 }
 0xba3   :  { %v2470_v22 = vpop.eup %2469 }
 0xba4   :  { %1213 = vrot.lane.b32.xlu1 %v2470_v22, %s2545_s20 }
 0xba7   :  { %v2472_v23 = vpop.eup %2471 }
 0xba8   :  { %1237 = vrot.lane.b32.xlu0 %v2472_v23, %s2545_s20  ;;  %v2474_v33 = vpop.eup %2473 }
 0xba9   :  { %v1207_v34 = vadd.f32 1.0, %v2474_v33  ;;  %v2476_v43 = vpop.eup %2475 }
 0xbaa   :  { %v1231_v37 = vadd.f32 1.0, %v2476_v43 }
 0xbab   :  { %2477 = vrcp.f32 %v1207_v34 }
 0xbac   :  { %2479 = vrcp.f32 %v1231_v37 }
 0xbb8   :  { %v2478_v58 = vpop.eup %2477 }
 0xbb9   :  { %v2480_v29 = vpop.eup %2479  ;;  %v1211_v13 = vmul.f32 %v2478_v58, %v3093_v10 }
 0xc16   :  { %v1214_v21 = vpop.permute.xlu1 %1213 }
 0xc17   :  { %v1216_v48 = vmul.f32 %v2478_v58, %v1214_v21 }
 0xc19   :  { %1218 = vrot.lane.b32.xlu1 %v1216_v48, %s2543_s13 }
 0xc1a   :  { %v1238_v40 = vpop.permute.xlu0 %1237 }
 0xc1b   :  { %v1240_v42 = vmul.f32 %v2480_v29, %v1238_v40 }
 0xc1d   :  { %1242 = vrot.lane.b32.xlu0 %v1240_v42, %s2543_s13  ;;  %1260 = vperm.xlu1 %2404, %v3004_v32  }
 0xc21   :  { %1272 = vperm.xlu0 %2403, %v2998_v39   ;;  %v1235_v39 = vmul.f32 %v2480_v29, %v3102_v14 }
 0xc8b   :  { %v1219_v55 = vpop.permute.xlu1 %1218 }
 0xc8c   :  { %v3096_v60 = vadd.f32 %v1219_v55, %v1211_v13 }
 0xc8e   :  { %2481 = vtanh.f32 %v3096_v60 }
 0xc8f   :  { %v1243_v32 = vpop.permute.xlu0 %1242 }
 0xc90   :  { %v3106_v15 = vadd.f32 %v1243_v32, %v1235_v39 }
 0xc92   :  { %2483 = vtanh.f32 %v3106_v15 }
 0xc98   :  { %v3111_v16 = vpop.permute.xlu1 %1260 }
 0xc99   :  { %vm1262_vm8 = vcmp.eq.s32.totalorder %v3111_v16, 1 }
 0xc9a   :  { %v3175_v55 = vsel %vm1262_vm8, %v3096_v60, %v3093_v10 }
 0xc9b   :  { %v2482_v35 = vpop.eup %2481 }
 0xc9c   :  { %1224 = vrot.lane.b32.xlu1 %v2482_v35, %s2545_s20  ;;  %v3113_v17 = vpop.permute.xlu0 %1272 }
 0xc9d   :  { %vm1274_vm11 = vcmp.eq.s32.totalorder %v3113_v17, 1 }
 0xc9f   :  { %v2484_v61 = vpop.eup %2483 }
 0xca0   :  { %1248 = vrot.lane.b32.xlu0 %v2484_v61, %s2545_s20  ;;  %v3184_v61 = vsel %vm1274_vm11, %v3106_v15, %v3102_v14 }
 0xd0e   :  { %v1225_v30 = vpop.permute.xlu1 %1224 }
 0xd0f   :  { %v3115_v54 = vmul.f32 %v2478_v58, %v1225_v30 }
 0xd11   :  { %v3122_v18 = vsel %vm1262_vm8, %v3115_v54, %v3040_v9  ;;  %v1263_v47 = vsel %vm1262_vm8, %v3115_v54, 0.0 }
 0xd12   :  { %v1249_v19 = vpop.permute.xlu0 %1248  ;;  %1289 = vrot.lane.b32.xlu1 %v3122_v18, %s2543_s13 }
 0xd13   :  { %v3126_v20 = vmul.f32 %v2480_v29, %v1249_v19 }
 0xd15   :  { %v3133_v22 = vsel %vm1274_vm11, %v3126_v20, %v3051_v12 }
 0xd16   :  { %1367 = vrot.lane.b32.xlu0 %v3133_v22, %s2543_s13 }
 0xd84   :  { %v1290_v23 = vpop.permute.xlu1 %1289 }
 0xd85   :  { %2340 = vmatmul.mubr.msk.f32.vlgmr.msra.gmra.mxu0 %vm88_vm2, %v1290_v23 }
 0xd86   :  { %2354 = vmatpush3.msra.mxu0 %v2596_v1  ;;  %2361 = vmatprep.mubr.msk.f32.mxu0 %vm2542_vm1, %v2541_v0  ;;  %v2111_v1 = vld [vmem:[%s3486_s0 + $0xa] sm:$0x3] }
 0xd87   :  { %2355 = vmatprep.subr.mxu0 %v2541_v0 }
 0xd88   :  { %v1368_v9 = vpop.permute.xlu0 %1367  ;;  %2356 = vmatpush3.msra.mxu0 %v2602_v2 }
 0xd89   :  { %2351 = vmatmul.mubr.msk.f32.vlgmr.msra.gmra.mxu1 %vm88_vm2, %v1368_v9  ;;  %2357 = vmatprep.subr.mxu0 %v2541_v0 }
 0xd8a   :  { %2358 = vmatpush3.msra.mxu0 %v2641_v5  ;;  %2365 = vmatpush3.msra.mxu1 %v2607_v3  ;;  %v2113_v5 = vld [vmem:[%s3487_s1 + $0x4] sm:$0x3] }
 0xd8b   :  { %2359 = vmatprep.subr.mxu0 %v2541_v0  ;;  %2366 = vmatprep.subr.mxu1 %v2541_v0 }
 0xd8c   :  { %2360 = vmatpush3.msra.mxu0 %v2655_v7  ;;  %2367 = vmatpush3.msra.mxu1 %v2634_v4 }
 0xd8d   :  { %2368 = vmatprep.subr.mxu1 %v2541_v0  ;;  %2372 = vmatprep.mubr.msk.f32.mxu1 %vm2542_vm1, %v2541_v0 }
 0xd8e   :  { %2369 = vmatpush3.msra.mxu1 %v2648_v6  ;;  %2375 = vmatprep.subr.mxu0 %v2541_v0 }
 0xd8f   :  { %2370 = vmatprep.subr.mxu1 %v2541_v0 }
 0xd90   :  { %2371 = vmatpush3.msra.mxu1 %v2663_v8 }
 0xd91   :  { %2386 = vmatprep.subr.mxu1 %v2541_v0 }
 0xe45   :  { %v1359_v2 = vpop.f32.mrf.mxu0 }
 0xe46   :  { %v1363_v3 = vadd.f32 %v2111_v1, %v1359_v2 }
 0xe47   :  { %v2341_v4 = vpop.f32.mrf.mxu0 }
 0xe48   :  { %2485 = vtanh.f32 %v1363_v3  ;;  %v2115_v26 = vmul.f32 -1.442695, %v1363_v3 }
 0xe49   :  { %v1437_v6 = vpop.f32.mrf.mxu1 }
 0xe4a   :  { %v1441_v7 = vadd.f32 %v2113_v5, %v1437_v6  ;;  %v2535_v6 = vld [vmem:[%s3482_s2 + $0x8] sm:$0xff] }
 0xe4b   :  { %v2352_v12 = vpop.f32.mrf.mxu1 }
 0xe4c   :  { %2487 = vtanh.f32 %v1441_v7  ;;  %v2116_v33 = vmul.f32 -1.442695, %v1441_v7  ;;  %v2536_v7 = vld [vmem:[%s3483_s3 + $0x18] sm:$0xff]  ;;  %v2537_v12 = vld [vmem:[%s3482_s2] sm:$0xff] }
 0xe4d   :  { %2489 = vpow2.f32 %v2115_v26  ;;  %v2540_v26 = vld [vmem:[%s3483_s3] sm:$0xff] }
 0xe4e   :  { %2491 = vpow2.f32 %v2116_v33  ;;  %v2121_v33 = vld [vmem:[%s3486_s0 + $0xc] sm:$0x3] }
 0xe55   :  { %v2486_v24 = vpop.eup %2485 }
 0xe56   :  { %1451 = vrot.lane.b32.xlu1 %v2486_v24, %s2545_s20  ;;  %v2538_v24 = vld [vmem:[%s3483_s3 + $0x10] sm:$0xff] }
 0xe59   :  { %v2488_v8 = vpop.eup %2487 }
 0xe5a   :  { %1475 = vrot.lane.b32.xlu0 %v2488_v8, %s2545_s20  ;;  %v2490_v34 = vpop.eup %2489  ;;  %v2539_v8 = vld [vmem:[%s3483_s3 + $0x8] sm:$0xff] }
 0xe5b   :  { %v1445_v43 = vadd.f32 1.0, %v2490_v34  ;;  %v2492_v37 = vpop.eup %2491 }
 0xe5c   :  { %v1469_v58 = vadd.f32 1.0, %v2492_v37 }
 0xe5d   :  { %2493 = vrcp.f32 %v1445_v43 }
 0xe5e   :  { %2495 = vrcp.f32 %v1469_v58  ;;  %v2123_v58 = vld [vmem:[%s3487_s1 + $0x2] sm:$0x3] }
 0xe6a   :  { %v2494_v21 = vpop.eup %2493 }
 0xe6b   :  { %v2496_v40 = vpop.eup %2495  ;;  %v1449_v39 = vmul.f32 %v2494_v21, %v3175_v55 }
 0xec8   :  { %v1452_v48 = vpop.permute.xlu1 %1451 }
 0xec9   :  { %v1454_v29 = vmul.f32 %v2494_v21, %v1452_v48 }
 0xecb   :  { %1456 = vrot.lane.b32.xlu1 %v1454_v29, %s2543_s13 }
 0xecc   :  { %v1476_v42 = vpop.permute.xlu0 %1475 }
 0xecd   :  { %v1478_v13 = vmul.f32 %v2496_v40, %v1476_v42 }
 0xecf   :  { %1480 = vrot.lane.b32.xlu0 %v1478_v13, %s2543_s13  ;;  %1498 = vperm.xlu1 %2404, %v2914_v27  }
 0xed3   :  { %1510 = vperm.xlu0 %2403, %v2908_v25   ;;  %v1473_v25 = vmul.f32 %v2496_v40, %v3184_v61 }
 0xf3d   :  { %v1457_v32 = vpop.permute.xlu1 %1456 }
 0xf3e   :  { %v3178_v35 = vadd.f32 %v1457_v32, %v1449_v39 }
 0xf40   :  { %2497 = vtanh.f32 %v3178_v35 }
 0xf41   :  { %v1481_v27 = vpop.permute.xlu0 %1480 }
 0xf42   :  { %v3188_v30 = vadd.f32 %v1481_v27, %v1473_v25 }
 0xf44   :  { %2499 = vtanh.f32 %v3188_v30 }
 0xf4a   :  { %v3193_v19 = vpop.permute.xlu1 %1498 }
 0xf4b   :  { %vm1500_vm12 = vcmp.eq.s32.totalorder %v3193_v19, 1 }
 0xf4d   :  { %v2498_v10 = vpop.eup %2497 }
 0xf4e   :  { %1462 = vrot.lane.b32.xlu1 %v2498_v10, %s2545_s20  ;;  %v3195_v23 = vpop.permute.xlu0 %1510 }
 0xf4f   :  { %vm1512_vm15 = vcmp.eq.s32.totalorder %v3195_v23, 1 }
 0xf51   :  { %v2500_v60 = vpop.eup %2499 }
 0xf52   :  { %1486 = vrot.lane.b32.xlu0 %v2500_v60, %s2545_s20 }
 0xfc0   :  { %v1463_v14 = vpop.permute.xlu1 %1462 }
 0xfc1   :  { %v3197_v15 = vmul.f32 %v2494_v21, %v1463_v14 }
 0xfc3   :  { %v3204_v9 = vsel %vm1500_vm12, %v3197_v15, %v3122_v18  ;;  %v2533_v18 = vld [vmem:[%s3482_s2 + $0x18] sm:$0xff]  ;;  %v1501_v53 = vsel %vm1500_vm12, %v3197_v15, 0.0 }
 0xfc4   :  { %v1487_v1 = vpop.permute.xlu0 %1486  ;;  %1527 = vrot.lane.b32.xlu1 %v3204_v9, %s2543_s13 }
 0xfc5   :  { %v3208_v2 = vmul.f32 %v2496_v40, %v1487_v1 }
 0xfc7   :  { %v3215_v3 = vsel %vm1512_vm15, %v3208_v2, %v3133_v22  ;;  %v2534_v22 = vld [vmem:[%s3482_s2 + $0x10] sm:$0xff]  ;;  %v1513_v51 = vsel %vm1512_vm15, %v3208_v2, 0.0 }
 0xfc8   :  { %1605 = vrot.lane.b32.xlu0 %v3215_v3, %s2543_s13 }
0x1036   :  { %v1528_v4 = vpop.permute.xlu1 %1527 }
0x1037   :  { %2362 = vmatmul.mubr.msk.f32.vlgmr.msra.gmra.mxu0 %vm88_vm2, %v1528_v4 }
0x1038   :  { %2376 = vmatpush3.msra.mxu0 %v2533_v18  ;;  %2383 = vmatprep.mubr.msk.f32.mxu0 %vm2542_vm1, %v2541_v0 }
0x1039   :  { %2377 = vmatprep.subr.mxu0 %v2541_v0 }
0x103a   :  { %v1606_v5 = vpop.permute.xlu0 %1605  ;;  %2378 = vmatpush3.msra.mxu0 %v2534_v22 }
0x103b   :  { %2373 = vmatmul.mubr.msk.f32.vlgmr.msra.gmra.mxu1 %vm88_vm2, %v1606_v5  ;;  %2379 = vmatprep.subr.mxu0 %v2541_v0  ;;  %v3271_v5 = vsel %vm1500_vm12, %v3178_v35, %v3175_v55 }
0x103c   :  { %2380 = vmatpush3.msra.mxu0 %v2535_v6  ;;  %2387 = vmatpush3.msra.mxu1 %v2536_v7 }
0x103d   :  { %2381 = vmatprep.subr.mxu0 %v2541_v0  ;;  %2388 = vmatprep.subr.mxu1 %v2541_v0 }
0x103e   :  { %2382 = vmatpush3.msra.mxu0 %v2537_v12  ;;  %2389 = vmatpush3.msra.mxu1 %v2538_v24  ;;  %v3278_v12 = vsel %vm1512_vm15, %v3188_v30, %v3184_v61 }
0x103f   :  { %2390 = vmatprep.subr.mxu1 %v2541_v0  ;;  %2394 = vmatprep.mubr.msk.f32.mxu1 %vm2542_vm1, %v2541_v0 }
0x1040   :  { %2391 = vmatpush3.msra.mxu1 %v2539_v8 }
0x1041   :  { %2392 = vmatprep.subr.mxu1 %v2541_v0 }
0x1042   :  { %2393 = vmatpush3.msra.mxu1 %v2540_v26 }
0x10f7   :  { %v1597_v34 = vpop.f32.mrf.mxu0 }
0x10f8   :  { %v1601_v43 = vadd.f32 %v2121_v33, %v1597_v34 }
0x10f9   :  { %v2363_v37 = vpop.f32.mrf.mxu0 }
0x10fa   :  { %2501 = vtanh.f32 %v1601_v43  ;;  %v2125_v42 = vmul.f32 -1.442695, %v1601_v43 }
0x10fb   :  { %v1675_v21 = vpop.f32.mrf.mxu1 }
0x10fc   :  { %v1679_v48 = vadd.f32 %v2123_v58, %v1675_v21  ;;  %v2131_v21 = vld [vmem:[%s3486_s0 + $0xe] sm:$0x3] }
0x10fd   :  { %v2374_v0 = vpop.f32.mrf.mxu1 }
0x10fe   :  { %2503 = vtanh.f32 %v1679_v48  ;;  %v2126_v13 = vmul.f32 -1.442695, %v1679_v48 }
0x10ff   :  { %2505 = vpow2.f32 %v2125_v42 }
0x1100   :  { %2507 = vpow2.f32 %v2126_v13 }
0x1107   :  { %v2502_v29 = vpop.eup %2501 }
0x1108   :  { %1689 = vrot.lane.b32.xlu1 %v2502_v29, %s2545_s20 }
0x110b   :  { %v2504_v40 = vpop.eup %2503 }
0x110c   :  { %1713 = vrot.lane.b32.xlu0 %v2504_v40, %s2545_s20  ;;  %v2506_v39 = vpop.eup %2505 }
0x110d   :  { %v1683_v32 = vadd.f32 1.0, %v2506_v39  ;;  %v2508_v25 = vpop.eup %2507 }
0x110e   :  { %v1707_v27 = vadd.f32 1.0, %v2508_v25 }
0x110f   :  { %2509 = vrcp.f32 %v1683_v32 }
0x1110   :  { %2511 = vrcp.f32 %v1707_v27 }
0x111c   :  { %v2510_v10 = vpop.eup %2509 }
0x111d   :  { %v2512_v1 = vpop.eup %2511  ;;  %v1687_v22 = vmul.f32 %v2510_v10, %v3271_v5 }
0x117a   :  { %v1690_v60 = vpop.permute.xlu1 %1689 }
0x117b   :  { %v1692_v14 = vmul.f32 %v2510_v10, %v1690_v60 }
0x117d   :  { %1694 = vrot.lane.b32.xlu1 %v1692_v14, %s2543_s13 }
0x117e   :  { %v1714_v4 = vpop.permute.xlu0 %1713 }
0x117f   :  { %v1716_v18 = vmul.f32 %v2512_v1, %v1714_v4 }
0x1181   :  { %1718 = vrot.lane.b32.xlu0 %v1716_v18, %s2543_s13  ;;  %1736 = vperm.xlu1 %2404, %v2824_v31   ;;  %v1711_v31 = vmul.f32 %v2512_v1, %v3278_v12 }
0x1185   :  { %1748 = vperm.xlu0 %2403, %v2818_v28  }
0x11ef   :  { %v1695_v6 = vpop.permute.xlu1 %1694 }
0x11f0   :  { %v1697_v7 = vadd.f32 %v1695_v6, %v1687_v22 }
0x11f2   :  { %2513 = vtanh.f32 %v1697_v7 }
0x11f3   :  { %v1719_v28 = vpop.permute.xlu0 %1718 }
0x11f4   :  { %v1721_v24 = vadd.f32 %v1719_v28, %v1711_v31 }
0x11f6   :  { %2515 = vtanh.f32 %v1721_v24 }
0x11fc   :  { %v3283_v35 = vpop.permute.xlu1 %1736 }
0x11fd   :  { %vm1738_vm1 = vcmp.eq.s32.totalorder %v3283_v35, 1 }
0x11ff   :  { %v2514_v8 = vpop.eup %2513 }
0x1200   :  { %1700 = vrot.lane.b32.xlu1 %v2514_v8, %s2545_s20  ;;  %v3285_v26 = vpop.permute.xlu0 %1748  ;;  %v1759_v8 = vsel %vm1738_vm1, %v1697_v7, %v3271_v5  ;;  %v305_v5 = vsel %vm304_vm5, %v2765_v52, 0.0  ;;  %v317_v7 = vsel %vm316_vm6, %v2775_v56, 0.0  ;;  %v787_v52 = vsel %vm786_vm13, %v2943_v44, 0.0 }
0x1201   :  { %vm1750_vm3 = vcmp.eq.s32.totalorder %v3285_v26, 1  ;;  %v1025_v56 = vsel %vm1024_vm4, %v3033_v41, 0.0 }
0x1203   :  { %v2516_v55 = vpop.eup %2515 }
0x1204   :  { %1724 = vrot.lane.b32.xlu0 %v2516_v55, %s2545_s20 }
0x1272   :  { %v1701_v33 = vpop.permute.xlu1 %1700 }
0x1273   :  { %v3287_v34 = vmul.f32 %v2510_v10, %v1701_v33 }
0x1275   :  { %v3294_v61 = vsel %vm1738_vm1, %v3287_v34, %v3204_v9  ;;  %v1739_v57 = vsel %vm1738_vm1, %v3287_v34, 0.0 }
0x1276   :  { %v1725_v30 = vpop.permute.xlu0 %1724  ;;  %1765 = vrot.lane.b32.xlu1 %v3294_v61, %s2543_s13 }
0x1277   :  { %v3298_v43 = vmul.f32 %v2512_v1, %v1725_v30 }
0x1279   :  { %v3305_v37 = vsel %vm1750_vm3, %v3298_v43, %v3215_v3  ;;  %v1840_v3 = vld [vmem:[%s3487_s1] sm:$0x3]  ;;  %v1751_v59 = vsel %vm1750_vm3, %v3298_v43, 0.0 }
0x127a   :  { %1842 = vrot.lane.b32.xlu0 %v3305_v37, %s2543_s13 }
0x12e8   :  { %v1766_v58 = vpop.permute.xlu1 %1765 }
0x12e9   :  { %2384 = vmatmul.mubr.msk.f32.vlgmr.msra.gmra.mxu0 %vm88_vm2, %v1766_v58  ;;  %v3329_v58 = vsel %vm1750_vm3, %v1721_v24, %v3278_v12  ;;  %v549_v12 = vsel %vm548_vm9, %v2853_v46, 0.0  ;;  %v1275_v46 = vsel %vm1274_vm11, %v3126_v20, 0.0 }
0x12ec   :  { %v1843_v9 = vpop.permute.xlu0 %1842 }
0x12ed   :  { %2395 = vmatmul.mubr.msk.f32.vlgmr.msra.gmra.mxu1 %vm88_vm2, %v1843_v9 }
0x13a9   :  { %v1835_v48 = vpop.f32.mrf.mxu0 }
0x13aa   :  { %v1839_v0 = vadd.f32 %v2131_v21, %v1835_v48 }
0x13ab   :  { %v2385_v29 = vpop.f32.mrf.mxu0 }
0x13ac   :  { %2517 = vtanh.f32 %v1839_v0  ;;  %v2134_v25 = vmul.f32 -1.442695, %v1839_v0 }
0x13ad   :  { %v1912_v40 = vpop.f32.mrf.mxu1 }
0x13ae   :  { %v1916_v42 = vadd.f32 %v1912_v40, %v1840_v3 }
0x13af   :  { %v2396_v13 = vpop.f32.mrf.mxu1 }
0x13b0   :  { %2519 = vtanh.f32 %v1916_v42  ;;  %v2135_v27 = vmul.f32 -1.442695, %v1916_v42 }
0x13b1   :  { %2521 = vpow2.f32 %v2134_v25 }
0x13b2   :  { %2523 = vpow2.f32 %v2135_v27 }
0x13b9   :  { %v2518_v39 = vpop.eup %2517 }
0x13ba   :  { %1926 = vrot.lane.b32.xlu1 %v2518_v39, %s2545_s20 }
0x13bd   :  { %v2520_v32 = vpop.eup %2519 }
0x13be   :  { %1950 = vrot.lane.b32.xlu0 %v2520_v32, %s2545_s20  ;;  %v2522_v10 = vpop.eup %2521 }
0x13bf   :  { %v1920_v60 = vadd.f32 1.0, %v2522_v10  ;;  %v2524_v14 = vpop.eup %2523 }
0x13c0   :  { %v1944_v1 = vadd.f32 1.0, %v2524_v14 }
0x13c1   :  { %2525 = vrcp.f32 %v1920_v60 }
0x13c2   :  { %2527 = vrcp.f32 %v1944_v1 }
0x13ce   :  { %v2526_v4 = vpop.eup %2525 }
0x13cf   :  { %v2528_v6 = vpop.eup %2527  ;;  %v1924_v55 = vmul.f32 %v2526_v4, %v1759_v8 }
0x13d0   :  { %v1948_v9 = vmul.f32 %v2528_v6, %v3329_v58 }
0x142c   :  { %v1927_v18 = vpop.permute.xlu1 %1926 }
0x142d   :  { %v1929_v22 = vmul.f32 %v2526_v4, %v1927_v18 }
0x142f   :  { %1931 = vrot.lane.b32.xlu1 %v1929_v22, %s2543_s13 }
0x1430   :  { %v1951_v31 = vpop.permute.xlu0 %1950 }
0x1431   :  { %v1953_v28 = vmul.f32 %v2528_v6, %v1951_v31 }
0x1433   :  { %1955 = vrot.lane.b32.xlu0 %v1953_v28, %s2543_s13  ;;  %1972 = vperm.xlu1 %2404, %v2740_v38  }
0x1437   :  { %1984 = vperm.xlu0 %2403, %v2734_v36  }
0x14a1   :  { %v1932_v33 = vpop.permute.xlu1 %1931 }
0x14a2   :  { %v1934_v30 = vadd.f32 %v1932_v33, %v1924_v55 }
0x14a4   :  { %2529 = vtanh.f32 %v1934_v30 }
0x14a5   :  { %v1956_v21 = vpop.permute.xlu0 %1955 }
0x14a6   :  { %v1958_v48 = vadd.f32 %v1956_v21, %v1948_v9 }
0x14a8   :  { %2531 = vtanh.f32 %v1958_v48 }
0x14ae   :  { %v1973_v44 = vpop.permute.xlu1 %1972 }
0x14af   :  { %vm1974_vm2 = vcmp.eq.s32.totalorder %v1973_v44, 1 }
0x14b0   :  { %v1994_v62 = vsel %vm1974_vm2, %v1934_v30, %v1759_v8 }
0x14b1   :  { %v2530_v38 = vpop.eup %2529 }
0x14b2   :  { %1937 = vrot.lane.b32.xlu1 %v2530_v38, %s2545_s20  ;;  %v1985_v63 = vpop.permute.xlu0 %1984 }
0x14b3   :  { %vm1986_vm5 = vcmp.eq.s32.totalorder %v1985_v63, 1 }
0x14b4   :  { %v1996_v24 = vsel %vm1986_vm5, %v1958_v48, %v3329_v58 }
0x14b5   :  { %v2532_v36 = vpop.eup %2531 }
0x14b6   :  { %1961 = vrot.lane.b32.xlu0 %v2532_v36, %s2545_s20  ;;  %307 = vrot.lane.b32.xlu1 %v305_v5, %s2543_s13 }
0x14ba   :  { %319 = vrot.lane.b32.xlu0 %v317_v7, %s2543_s13  ;;  %551 = vrot.lane.b32.xlu1 %v549_v12, %s2543_s13 }
0x14be   :  { %563 = vrot.lane.b32.xlu0 %v561_v50, %s2543_s13  ;;  %789 = vrot.lane.b32.xlu1 %v787_v52, %s2543_s13 }
0x14c2   :  { %801 = vrot.lane.b32.xlu0 %v799_v49, %s2543_s13  ;;  %1027 = vrot.lane.b32.xlu1 %v1025_v56, %s2543_s13 }
0x14c6   :  { %1039 = vrot.lane.b32.xlu0 %v1037_v45, %s2543_s13  ;;  %1265 = vrot.lane.b32.xlu1 %v1263_v47, %s2543_s13 }
0x14ca   :  { %1277 = vrot.lane.b32.xlu0 %v1275_v46, %s2543_s13  ;;  %1503 = vrot.lane.b32.xlu1 %v1501_v53, %s2543_s13 }
0x14ce   :  { %1515 = vrot.lane.b32.xlu0 %v1513_v51, %s2543_s13  ;;  %1741 = vrot.lane.b32.xlu1 %v1739_v57, %s2543_s13 }
0x14d2   :  { %1753 = vrot.lane.b32.xlu0 %v1751_v59, %s2543_s13 }
0x14d6   :  { %2003 = vrot.lane.b32.xlu0 %v1994_v62, %s2546_s4 }
0x1524   :  { %v1938_v41 = vpop.permute.xlu1 %1937 }
0x1525   :  { %v1940_v11 = vmul.f32 %v2526_v4, %v1938_v41 }
0x1527   :  { %v1975_v16 = vsel %vm1974_vm2, %v1940_v11, 0.0  ;;  %v1993_v23 = vsel %vm1974_vm2, %v1940_v11, %v3294_v61 }
0x1528   :  { %v1962_v17 = vpop.permute.xlu0 %1961  ;;  %1977 = vrot.lane.b32.xlu1 %v1975_v16, %s2543_s13  ;;  %v308_v54 = vpop.permute.xlu1 %307 }
0x1529   :  { %v1964_v20 = vmul.f32 %v2528_v6, %v1962_v17  ;;  %311 = vst.msk [vmem:[%s3489_s5] sm:$0x3] %vm64_vm0, %v308_v54 }
0x152b   :  { %v1987_v19 = vsel %vm1986_vm5, %v1964_v20, 0.0  ;;  %v1995_v35 = vsel %vm1986_vm5, %v1964_v20, %v3305_v37 }
0x152c   :  { %v320_v15 = vpop.permute.xlu0 %319  ;;  %1989 = vrot.lane.b32.xlu0 %v1987_v19, %s2543_s13  ;;  %1998 = vrot.lane.b32.xlu1 %v1993_v23, %s2543_s13  ;;  %v552_v2 = vpop.permute.xlu1 %551 }
0x152d   :  { %2070 = vst.msk [vmem:[%s3490_s6 + $0xe] sm:$0x3] %vm64_vm0, %v320_v15  ;;  %2079 = vst.msk [vmem:[%s3489_s5 + $0x2] sm:$0x3] %vm64_vm0, %v552_v2 }
0x1530   :  { %v564_v26 = vpop.permute.xlu0 %563  ;;  %2013 = vrot.lane.b32.xlu0 %v1996_v24, %s2546_s4  ;;  %2008 = vrot.lane.b32.xlu1 %v1995_v35, %s2543_s13  ;;  %v790_v34 = vpop.permute.xlu1 %789 }
0x1531   :  { %2080 = vst.msk [vmem:[%s3490_s6 + $0xc] sm:$0x3] %vm64_vm0, %v564_v26  ;;  %2089 = vst.msk [vmem:[%s3489_s5 + $0x4] sm:$0x3] %vm64_vm0, %v790_v34 }
0x1534   :  { %v802_v61 = vpop.permute.xlu0 %801  ;;  %v1028_v43 = vpop.permute.xlu1 %1027 }
0x1535   :  { %2090 = vst.msk [vmem:[%s3490_s6 + $0xa] sm:$0x3] %vm64_vm0, %v802_v61  ;;  %2099 = vst.msk [vmem:[%s3489_s5 + $0x6] sm:$0x3] %vm64_vm0, %v1028_v43 }
0x1538   :  { %v1040_v37 = vpop.permute.xlu0 %1039  ;;  %v1266_v0 = vpop.permute.xlu1 %1265 }
0x1539   :  { %2100 = vst.msk [vmem:[%s3490_s6 + $0x8] sm:$0x3] %vm64_vm0, %v1040_v37  ;;  %2109 = vst.msk [vmem:[%s3489_s5 + $0x8] sm:$0x3] %vm64_vm0, %v1266_v0 }
0x153c   :  { %v1278_v29 = vpop.permute.xlu0 %1277  ;;  %v1504_v3 = vpop.permute.xlu1 %1503 }
0x153d   :  { %2110 = vst.msk [vmem:[%s3490_s6 + $0x6] sm:$0x3] %vm64_vm0, %v1278_v29  ;;  %2119 = vst.msk [vmem:[%s3489_s5 + $0xa] sm:$0x3] %vm64_vm0, %v1504_v3 }
0x1540   :  { %v1516_v40 = vpop.permute.xlu0 %1515  ;;  %v1742_v42 = vpop.permute.xlu1 %1741 }
0x1541   :  { %2120 = vst.msk [vmem:[%s3490_s6 + $0x4] sm:$0x3] %vm64_vm0, %v1516_v40  ;;  %2129 = vst.msk [vmem:[%s3489_s5 + $0xc] sm:$0x3] %vm64_vm0, %v1742_v42 }
0x1544   :  { %v1754_v13 = vpop.permute.xlu0 %1753 }
0x1545   :  { %2130 = vst.msk [vmem:[%s3490_s6 + $0x2] sm:$0x3] %vm64_vm0, %v1754_v13 }
0x1548   :  { %v2004_v39 = vpop.permute.xlu0 %2003 }
0x1549   :  { %2006 = vst.msk [vmem:[%s3485_s8] sm:$0x3] %vm64_vm0, %v2004_v39 }
0x159a   :  { %v1978_v32 = vpop.permute.xlu1 %1977 }
0x159b   :  { %2138 = vst.msk [vmem:[%s3489_s5 + $0xe] sm:$0x3] %vm64_vm0, %v1978_v32 }
0x159e   :  { %v1990_v25 = vpop.permute.xlu0 %1989  ;;  %v1999_v27 = vpop.permute.xlu1 %1998 }
0x159f   :  { %1992 = vst.msk [vmem:[%s3490_s6] sm:$0x3] %vm64_vm0, %v1990_v25  ;;  %2001 = vst.msk [vmem:[%s3484_s7] sm:$0x3] %vm64_vm0, %v1999_v27 }
0x15a2   :  { %v2014_v10 = vpop.permute.xlu0 %2013  ;;  %v2009_v60 = vpop.permute.xlu1 %2008 }
0x15a3   :  { %2140 = vst.msk [vmem:[%s3485_s8 + $0x2] sm:$0x3] %vm64_vm0, %v2014_v10  ;;  %2139 = vst.msk [vmem:[%s3484_s7 + $0x2] sm:$0x3] %vm64_vm0, %v2009_v60 }

</bundles_post_ra>
